<compile_context>
chip_gen: v7x
topology: tpu7x:2x2x1
jax: 0.10.0
libtpu: 0.0.40
codegen_flags: <defaults>
</compile_context>

<pallas_src>
import jax
import jax.numpy as jnp
from jax.experimental import pallas as pl
from jax.experimental.pallas import tpu as pltpu

# ---- small deterministic config (consistent with the module's forward) ----
B = 2        # batch
TX = 8       # source sequence length
TY = 1       # decoder steps in forward (single step)
E = 16       # embedding dim
H = 32       # GRU hidden dim
V_SRC = 64   # source vocab
V_TGT = 64   # target vocab

G = 3 * H    # fused gate width (gate order r, z, n)

# Row offsets inside the packed weight slab (all multiples of 8 -> sublane-aligned slices).
R_ENC_WI = 0                    # (E, 3H)
R_ENC_WH = R_ENC_WI + E         # (H, 3H)
R_DEC_WIE = R_ENC_WH + H        # (E, 3H)  embedding part of decoder W_ih
R_DEC_WIC = R_DEC_WIE + E       # (H, 3H)  context   part of decoder W_ih
R_DEC_WH = R_DEC_WIC + H        # (H, 3H)
R_ENC_EMB = R_DEC_WH + H        # (V_SRC, E)  zero-padded to 3H lanes
R_DEC_EMB = R_ENC_EMB + V_SRC   # (V_TGT, E)  zero-padded
R_DEC_WO = R_DEC_EMB + V_TGT    # (H, V_TGT)  zero-padded
W_ROWS = R_DEC_WO + H           # 288

# Lane offsets inside the single packed (8, 128) output slab.
OUT_LANES = 128
O_LOGITS = 0
O_HIDDEN = V_TGT
O_ATTN = V_TGT + H


# --------------------------- fused seq2seq kernel ---------------------------
def seq2seq_kernel(x_ids_ref, y_ids_ref, w_ref, b_ref, out_ref):
    f32 = jnp.float32

    # ---- static slices of the two packed parameter slabs ----
    enc_wi = w_ref[R_ENC_WI:R_ENC_WI + E, :]            # (E, 3H)
    enc_wh = w_ref[R_ENC_WH:R_ENC_WH + H, :]            # (H, 3H)
    dec_wie = w_ref[R_DEC_WIE:R_DEC_WIE + E, :]         # (E, 3H)
    dec_wic = w_ref[R_DEC_WIC:R_DEC_WIC + H, :]         # (H, 3H)
    dec_wh = w_ref[R_DEC_WH:R_DEC_WH + H, :]            # (H, 3H)
    enc_emb = w_ref[R_ENC_EMB:R_ENC_EMB + V_SRC, 0:E]   # (V_SRC, E)
    dec_emb = w_ref[R_DEC_EMB:R_DEC_EMB + V_TGT, 0:E]   # (V_TGT, E)
    dec_wo = w_ref[R_DEC_WO:R_DEC_WO + H, 0:V_TGT]      # (H, V_TGT)

    enc_bi = b_ref[0:1, 0:G]        # (1, 3H)  [b_ir+b_hr, b_iz+b_hz, b_in]
    enc_bhn = b_ref[1:2, 0:H]       # (1, H)   b_hn
    dec_bi = b_ref[2:3, 0:G]
    dec_bhn = b_ref[3:4, 0:H]
    dec_bo = b_ref[4:5, 0:V_TGT]

    def gru_cell(gi, gh, h, bhn):
        # PyTorch nn.GRU gate order: r, z, n; r/z biases pre-folded into gi.
        r = jax.nn.sigmoid(gi[:, 0:H] + gh[:, 0:H])
        z = jax.nn.sigmoid(gi[:, H:2 * H] + gh[:, H:2 * H])
        n = jnp.tanh(gi[:, 2 * H:3 * H] + r * (gh[:, 2 * H:3 * H] + bhn))
        return (1.0 - z) * n + z * h

    # ---- encoder input path, hoisted out of the recurrence (does not depend on h) ----
    x_ids = x_ids_ref[...]                                           # (TX*B, 1) int32, time-major
    lane_src = jax.lax.broadcasted_iota(jnp.int32, (TX * B, V_SRC), 1)
    oh_x = (x_ids == lane_src).astype(f32)                           # (TX*B, V_SRC) one-hot
    x_emb = jnp.dot(oh_x, enc_emb, preferred_element_type=f32)       # (TX*B, E)
    gi_all = jnp.dot(x_emb, enc_wi, preferred_element_type=f32) + enc_bi  # (TX*B, 3H)

    # ---- encoder recurrence: only the h-dependent matmul + gate math per step ----
    h = jnp.zeros((B, H), f32)
    hs = []
    for t in range(TX):
        gi_t = gi_all[t * B:(t + 1) * B, :]                          # (B, 3H), precomputed
        gh = jnp.dot(h, enc_wh, preferred_element_type=f32)          # (B, 3H)
        h = gru_cell(gi_t, gh, h, enc_bhn)                           # (B, H)
        hs.append(h)
    enc = jnp.stack(hs, axis=1)                                      # (B, TX, H), stays in vregs
    # torch: hidden = hidden[:1, :, :] -> identity for 1-layer unidirectional GRU => h

    # ---- decoder: single target step with dot-product attention ----
    y_ids = y_ids_ref[...]                                           # (B, TY) int32
    lane_tgt = jax.lax.broadcasted_iota(jnp.int32, (B, V_TGT), 1)
    oh_y = (y_ids[:, 0:1] == lane_tgt).astype(f32)                   # (B, V_TGT)
    y_emb = jnp.dot(oh_y, dec_emb, preferred_element_type=f32)       # (B, E)

    # 1-query dot attention on VPU (mul) + XLU (reduce); no transpose / MXU round-trip.
    scores = jnp.sum(h[:, None, :] * enc, axis=-1)                   # (B, TX)
    m = jnp.max(scores, axis=-1, keepdims=True)
    e = jnp.exp(scores - m)
    denom = jnp.sum(e, axis=-1, keepdims=True)
    attn = e * pl.reciprocal(denom, approx=True)                     # (B, TX) softmax
    ctx = jnp.sum(attn[:, :, None] * enc, axis=1)                    # (B, H) context

    gi_d = (jnp.dot(y_emb, dec_wie, preferred_element_type=f32)
            + jnp.dot(ctx, dec_wic, preferred_element_type=f32)
            + dec_bi)                                                # (B, 3H)
    gh_d = jnp.dot(h, dec_wh, preferred_element_type=f32)            # (B, 3H)
    h_new = gru_cell(gi_d, gh_d, h, dec_bhn)                         # (B, H)

    logits = jnp.dot(h_new, dec_wo, preferred_element_type=f32) + dec_bo   # (B, V_TGT)

    # ---- single lane-dense (8,128) writeback: [logits | hidden | attn | pad] ----
    pad = OUT_LANES - (V_TGT + H + TX)
    row = jnp.concatenate(
        [logits, h_new, attn, jnp.zeros((B, pad), f32)], axis=1)     # (B, 128)
    full = jnp.concatenate([row, jnp.zeros((8 - B, OUT_LANES), f32)], axis=0)  # (8, 128)
    out_ref[...] = full


def seq2seq_pallas(x_tokens, y_tokens, params):
    # Layout plumbing only: present source token ids time-major so per-step gi slices
    # inside the kernel are contiguous sublane slices.
    x_tm = x_tokens.T.reshape(TX * B, 1).astype(jnp.int32)
    y_in = y_tokens.astype(jnp.int32)

    packed = pl.pallas_call(
        seq2seq_kernel,
        out_shape=jax.ShapeDtypeStruct((8, OUT_LANES), jnp.float32),
        in_specs=[pl.BlockSpec(memory_space=pltpu.MemorySpace.VMEM)] * 4,
        out_specs=pl.BlockSpec(memory_space=pltpu.MemorySpace.VMEM),
    )(x_tm, y_in, params["w"], params["b"])

    output = packed[0:B, O_LOGITS:O_LOGITS + V_TGT].reshape(B, TY, V_TGT)
    hidden = packed[0:B, O_HIDDEN:O_HIDDEN + H][None, :, :]          # (1, B, H)
    attn = packed[0:B, O_ATTN:O_ATTN + TX].reshape(B, TY, TX)
    return output, hidden, attn


# ----------------------------- parameter init ------------------------------
def _fuse_gate_weights(w_g):
    # (3, In, H) per-gate (r, z, n) -> (In, 3H) with gates along columns
    return jnp.concatenate([w_g[0], w_g[1], w_g[2]], axis=1)


def _fuse_biases(bi_g, bh_g):
    # fold b_ir + b_hr and b_iz + b_hz; b_in stays; b_hn must stay separate
    bi_fused = jnp.concatenate([bi_g[0] + bh_g[0], bi_g[1] + bh_g[1], bi_g[2]], axis=1)
    return bi_fused, bh_g[2]


def _pad_cols(a, width):
    return jnp.pad(a, ((0, 0), (0, width - a.shape[1])))


def init_params(key):
    ks = jax.random.split(key, 12)
    s = 0.1
    # per-gate params in PyTorch nn.GRU layout (gate order r, z, n)
    enc_wi_g = s * jax.random.normal(ks[1], (3, E, H), jnp.float32)
    enc_wh_g = s * jax.random.normal(ks[2], (3, H, H), jnp.float32)
    enc_bi_g = s * jax.random.normal(ks[3], (3, 1, H), jnp.float32)
    enc_bh_g = s * jax.random.normal(ks[4], (3, 1, H), jnp.float32)
    dec_wie_g = s * jax.random.normal(ks[6], (3, E, H), jnp.float32)
    dec_wic_g = s * jax.random.normal(ks[7], (3, H, H), jnp.float32)
    dec_wh_g = s * jax.random.normal(ks[8], (3, H, H), jnp.float32)
    dec_bi_g = s * jax.random.normal(ks[9], (3, 1, H), jnp.float32)
    dec_bh_g = s * jax.random.normal(ks[10], (3, 1, H), jnp.float32)

    enc_emb = s * jax.random.normal(ks[0], (V_SRC, E), jnp.float32)
    dec_emb = s * jax.random.normal(ks[5], (V_TGT, E), jnp.float32)
    dec_wo = s * jax.random.normal(ks[11], (H, V_TGT), jnp.float32)
    dec_bo = jnp.zeros((1, V_TGT), jnp.float32)

    enc_bi, enc_bhn = _fuse_biases(enc_bi_g, enc_bh_g)
    dec_bi, dec_bhn = _fuse_biases(dec_bi_g, dec_bh_g)

    # ---- pack 15 arrays into 2 slabs so the kernel prologue is 2 DMAs, not 15 ----
    w_slab = jnp.concatenate([
        _fuse_gate_weights(enc_wi_g),          # rows R_ENC_WI
        _fuse_gate_weights(enc_wh_g),          # rows R_ENC_WH
        _fuse_gate_weights(dec_wie_g),         # rows R_DEC_WIE
        _fuse_gate_weights(dec_wic_g),         # rows R_DEC_WIC
        _fuse_gate_weights(dec_wh_g),          # rows R_DEC_WH
        _pad_cols(enc_emb, G),                 # rows R_ENC_EMB
        _pad_cols(dec_emb, G),                 # rows R_DEC_EMB
        _pad_cols(dec_wo, G),                  # rows R_DEC_WO
    ], axis=0)
    assert w_slab.shape == (W_ROWS, G)

    b_slab = jnp.zeros((8, G), jnp.float32)
    b_slab = b_slab.at[0, 0:G].set(enc_bi[0])
    b_slab = b_slab.at[1, 0:H].set(enc_bhn[0])
    b_slab = b_slab.at[2, 0:G].set(dec_bi[0])
    b_slab = b_slab.at[3, 0:H].set(dec_bhn[0])
    b_slab = b_slab.at[4, 0:V_TGT].set(dec_bo[0])

    return {"w": w_slab, "b": b_slab}


# ------------------------------ seq2seq.forward ----------------------------
@jax.jit
def seq2seq_forward(params, x_tokens, y_tokens):
    # Embedding, encoder GRU over time, attention, decoder GRU step and output
    # projection all run inside a single fused Pallas kernel.
    return seq2seq_pallas(x_tokens, y_tokens, params)


if __name__ == "__main__":
    key = jax.random.PRNGKey(0)
    pkey, xkey, ykey = jax.random.split(key, 3)
    params = init_params(pkey)

    x = jax.random.randint(xkey, (B, TX), 0, V_SRC, dtype=jnp.int32)   # source tokens
    y = jax.random.randint(ykey, (B, TY), 0, V_TGT, dtype=jnp.int32)   # target token(s)

    output, hidden, atten_weights = seq2seq_forward(params, x, y)
    jax.block_until_ready((output, hidden, atten_weights))

    assert output.shape == (B, TY, V_TGT)
    assert hidden.shape == (1, B, H)
    assert atten_weights.shape == (B, TY, TX)
    print("KERNEL_OK")
</pallas_src>

<mosaic_0001>
module attributes {stable_mosaic.version = 11 : i64} {
  func.func @seq2seq_kernel(%arg0: memref<16x1xi32, #tpu.memory_space<vmem>>, %arg1: memref<2x1xi32, #tpu.memory_space<vmem>>, %arg2: memref<288x96xf32, #tpu.memory_space<vmem>>, %arg3: memref<8x96xf32, #tpu.memory_space<vmem>>, %arg4: memref<8x128xf32, #tpu.memory_space<vmem>>) attributes {dimension_semantics = [], scalar_prefetch = 0 : i64, scratch_operands = 0 : i64, tpu.core_type = #tpu.core_type<tc>} {
    %c0 = arith.constant 0 : index
    %c0_0 = arith.constant 0 : index
    %0 = vector.load %arg2[%c0, %c0_0] : memref<288x96xf32, #tpu.memory_space<vmem>>, vector<16x96xf32>
    %c16 = arith.constant 16 : index
    %c0_1 = arith.constant 0 : index
    %1 = vector.load %arg2[%c16, %c0_1] : memref<288x96xf32, #tpu.memory_space<vmem>>, vector<32x96xf32>
    %c48 = arith.constant 48 : index
    %c0_2 = arith.constant 0 : index
    %2 = vector.load %arg2[%c48, %c0_2] : memref<288x96xf32, #tpu.memory_space<vmem>>, vector<16x96xf32>
    %c64 = arith.constant 64 : index
    %c0_3 = arith.constant 0 : index
    %3 = vector.load %arg2[%c64, %c0_3] : memref<288x96xf32, #tpu.memory_space<vmem>>, vector<32x96xf32>
    %c96 = arith.constant 96 : index
    %c0_4 = arith.constant 0 : index
    %4 = vector.load %arg2[%c96, %c0_4] : memref<288x96xf32, #tpu.memory_space<vmem>>, vector<32x96xf32>
    %c128 = arith.constant 128 : index
    %c0_5 = arith.constant 0 : index
    %5 = vector.load %arg2[%c128, %c0_5] : memref<288x96xf32, #tpu.memory_space<vmem>>, vector<64x16xf32>
    %c192 = arith.constant 192 : index
    %c0_6 = arith.constant 0 : index
    %6 = vector.load %arg2[%c192, %c0_6] : memref<288x96xf32, #tpu.memory_space<vmem>>, vector<64x16xf32>
    %c256 = arith.constant 256 : index
    %c0_7 = arith.constant 0 : index
    %7 = vector.load %arg2[%c256, %c0_7] : memref<288x96xf32, #tpu.memory_space<vmem>>, vector<32x64xf32>
    %c0_8 = arith.constant 0 : index
    %c0_9 = arith.constant 0 : index
    %8 = vector.load %arg3[%c0_8, %c0_9] : memref<8x96xf32, #tpu.memory_space<vmem>>, vector<1x96xf32>
    %c1 = arith.constant 1 : index
    %c0_10 = arith.constant 0 : index
    %9 = vector.load %arg3[%c1, %c0_10] : memref<8x96xf32, #tpu.memory_space<vmem>>, vector<1x32xf32>
    %c2 = arith.constant 2 : index
    %c0_11 = arith.constant 0 : index
    %10 = vector.load %arg3[%c2, %c0_11] : memref<8x96xf32, #tpu.memory_space<vmem>>, vector<1x96xf32>
    %c3 = arith.constant 3 : index
    %c0_12 = arith.constant 0 : index
    %11 = vector.load %arg3[%c3, %c0_12] : memref<8x96xf32, #tpu.memory_space<vmem>>, vector<1x32xf32>
    %c4 = arith.constant 4 : index
    %c0_13 = arith.constant 0 : index
    %12 = vector.load %arg3[%c4, %c0_13] : memref<8x96xf32, #tpu.memory_space<vmem>>, vector<1x64xf32>
    %c0_14 = arith.constant 0 : index
    %c0_15 = arith.constant 0 : index
    %13 = vector.load %arg0[%c0_14, %c0_15] : memref<16x1xi32, #tpu.memory_space<vmem>>, vector<16x1xi32>
    %14 = tpu.iota {dimensions = array<i32: 1>} : vector<16x64xi32>
    %15 = vector.broadcast %13 : vector<16x1xi32> to vector<16x64xi32>
    %16 = arith.cmpi eq, %15, %14 : vector<16x64xi32>
    %17 = arith.extui %16 : vector<16x64xi1> to vector<16x64xi32>
    %18 = arith.sitofp %17 : vector<16x64xi32> to vector<16x64xf32>
    %cst = arith.constant dense<0.000000e+00> : vector<16x16xf32>
    %19 = tpu.matmul %18, %5, %cst {dimension_numbers = #tpu.dot_dimension_numbers<[1], [0], [0], [1], [0, 0, 1, 1], [], []>} : vector<16x64xf32>, vector<64x16xf32>, vector<16x16xf32> -> vector<16x16xf32>
    %cst_16 = arith.constant dense<0.000000e+00> : vector<16x96xf32>
    %20 = tpu.matmul %19, %0, %cst_16 {dimension_numbers = #tpu.dot_dimension_numbers<[1], [0], [0], [1], [0, 0, 1, 1], [], []>} : vector<16x16xf32>, vector<16x96xf32>, vector<16x96xf32> -> vector<16x96xf32>
    %21 = vector.broadcast %8 : vector<1x96xf32> to vector<16x96xf32>
    %22 = arith.addf %20, %21 : vector<16x96xf32>
    %cst_17 = arith.constant 0.000000e+00 : f32
    %23 = vector.broadcast %cst_17 : f32 to vector<2x32xf32>
    %24 = vector.extract_strided_slice %22 {offsets = [0, 0], sizes = [2, 96], strides = [1, 1]} : vector<16x96xf32> to vector<2x96xf32>
    %cst_18 = arith.constant dense<0.000000e+00> : vector<2x96xf32>
    %25 = tpu.matmul %23, %1, %cst_18 {dimension_numbers = #tpu.dot_dimension_numbers<[1], [0], [0], [1], [0, 0, 1, 1], [], []>} : vector<2x32xf32>, vector<32x96xf32>, vector<2x96xf32> -> vector<2x96xf32>
    %26 = vector.extract_strided_slice %24 {offsets = [0, 0], sizes = [2, 32], strides = [1, 1]} : vector<2x96xf32> to vector<2x32xf32>
    %27 = vector.extract_strided_slice %25 {offsets = [0, 0], sizes = [2, 32], strides = [1, 1]} : vector<2x96xf32> to vector<2x32xf32>
    %28 = arith.addf %26, %27 : vector<2x32xf32>
    %29 = arith.negf %28 : vector<2x32xf32>
    %30 = math.exp %29 : vector<2x32xf32>
    %cst_19 = arith.constant 1.000000e+00 : f32
    %31 = vector.broadcast %cst_19 : f32 to vector<2x32xf32>
    %32 = arith.addf %31, %30 : vector<2x32xf32>
    %33 = arith.divf %31, %32 : vector<2x32xf32>
    %34 = vector.extract_strided_slice %24 {offsets = [0, 32], sizes = [2, 32], strides = [1, 1]} : vector<2x96xf32> to vector<2x32xf32>
    %35 = vector.extract_strided_slice %25 {offsets = [0, 32], sizes = [2, 32], strides = [1, 1]} : vector<2x96xf32> to vector<2x32xf32>
    %36 = arith.addf %34, %35 : vector<2x32xf32>
    %37 = arith.negf %36 : vector<2x32xf32>
    %38 = math.exp %37 : vector<2x32xf32>
    %cst_20 = arith.constant 1.000000e+00 : f32
    %39 = vector.broadcast %cst_20 : f32 to vector<2x32xf32>
    %40 = arith.addf %39, %38 : vector<2x32xf32>
    %41 = arith.divf %39, %40 : vector<2x32xf32>
    %42 = vector.extract_strided_slice %24 {offsets = [0, 64], sizes = [2, 32], strides = [1, 1]} : vector<2x96xf32> to vector<2x32xf32>
    %43 = vector.extract_strided_slice %25 {offsets = [0, 64], sizes = [2, 32], strides = [1, 1]} : vector<2x96xf32> to vector<2x32xf32>
    %44 = vector.broadcast %9 : vector<1x32xf32> to vector<2x32xf32>
    %45 = arith.addf %43, %44 : vector<2x32xf32>
    %46 = arith.mulf %33, %45 : vector<2x32xf32>
    %47 = arith.addf %42, %46 : vector<2x32xf32>
    %48 = math.tanh %47 : vector<2x32xf32>
    %cst_21 = arith.constant 1.000000e+00 : f32
    %49 = vector.broadcast %cst_21 : f32 to vector<2x32xf32>
    %50 = arith.subf %49, %41 : vector<2x32xf32>
    %51 = arith.mulf %50, %48 : vector<2x32xf32>
    %52 = arith.mulf %41, %23 : vector<2x32xf32>
    %53 = arith.addf %51, %52 : vector<2x32xf32>
    %54 = vector.extract_strided_slice %22 {offsets = [2, 0], sizes = [2, 96], strides = [1, 1]} : vector<16x96xf32> to vector<2x96xf32>
    %cst_22 = arith.constant dense<0.000000e+00> : vector<2x96xf32>
    %55 = tpu.matmul %53, %1, %cst_22 {dimension_numbers = #tpu.dot_dimension_numbers<[1], [0], [0], [1], [0, 0, 1, 1], [], []>} : vector<2x32xf32>, vector<32x96xf32>, vector<2x96xf32> -> vector<2x96xf32>
    %56 = vector.extract_strided_slice %54 {offsets = [0, 0], sizes = [2, 32], strides = [1, 1]} : vector<2x96xf32> to vector<2x32xf32>
    %57 = vector.extract_strided_slice %55 {offsets = [0, 0], sizes = [2, 32], strides = [1, 1]} : vector<2x96xf32> to vector<2x32xf32>
    %58 = arith.addf %56, %57 : vector<2x32xf32>
    %59 = arith.negf %58 : vector<2x32xf32>
    %60 = math.exp %59 : vector<2x32xf32>
    %cst_23 = arith.constant 1.000000e+00 : f32
    %61 = vector.broadcast %cst_23 : f32 to vector<2x32xf32>
    %62 = arith.addf %61, %60 : vector<2x32xf32>
    %63 = arith.divf %61, %62 : vector<2x32xf32>
    %64 = vector.extract_strided_slice %54 {offsets = [0, 32], sizes = [2, 32], strides = [1, 1]} : vector<2x96xf32> to vector<2x32xf32>
    %65 = vector.extract_strided_slice %55 {offsets = [0, 32], sizes = [2, 32], strides = [1, 1]} : vector<2x96xf32> to vector<2x32xf32>
    %66 = arith.addf %64, %65 : vector<2x32xf32>
    %67 = arith.negf %66 : vector<2x32xf32>
    %68 = math.exp %67 : vector<2x32xf32>
    %cst_24 = arith.constant 1.000000e+00 : f32
    %69 = vector.broadcast %cst_24 : f32 to vector<2x32xf32>
    %70 = arith.addf %69, %68 : vector<2x32xf32>
    %71 = arith.divf %69, %70 : vector<2x32xf32>
    %72 = vector.extract_strided_slice %54 {offsets = [0, 64], sizes = [2, 32], strides = [1, 1]} : vector<2x96xf32> to vector<2x32xf32>
    %73 = vector.extract_strided_slice %55 {offsets = [0, 64], sizes = [2, 32], strides = [1, 1]} : vector<2x96xf32> to vector<2x32xf32>
    %74 = vector.broadcast %9 : vector<1x32xf32> to vector<2x32xf32>
    %75 = arith.addf %73, %74 : vector<2x32xf32>
    %76 = arith.mulf %63, %75 : vector<2x32xf32>
    %77 = arith.addf %72, %76 : vector<2x32xf32>
    %78 = math.tanh %77 : vector<2x32xf32>
    %cst_25 = arith.constant 1.000000e+00 : f32
    %79 = vector.broadcast %cst_25 : f32 to vector<2x32xf32>
    %80 = arith.subf %79, %71 : vector<2x32xf32>
    %81 = arith.mulf %80, %78 : vector<2x32xf32>
    %82 = arith.mulf %71, %53 : vector<2x32xf32>
    %83 = arith.addf %81, %82 : vector<2x32xf32>
    %84 = vector.extract_strided_slice %22 {offsets = [4, 0], sizes = [2, 96], strides = [1, 1]} : vector<16x96xf32> to vector<2x96xf32>
    %cst_26 = arith.constant dense<0.000000e+00> : vector<2x96xf32>
    %85 = tpu.matmul %83, %1, %cst_26 {dimension_numbers = #tpu.dot_dimension_numbers<[1], [0], [0], [1], [0, 0, 1, 1], [], []>} : vector<2x32xf32>, vector<32x96xf32>, vector<2x96xf32> -> vector<2x96xf32>
    %86 = vector.extract_strided_slice %84 {offsets = [0, 0], sizes = [2, 32], strides = [1, 1]} : vector<2x96xf32> to vector<2x32xf32>
    %87 = vector.extract_strided_slice %85 {offsets = [0, 0], sizes = [2, 32], strides = [1, 1]} : vector<2x96xf32> to vector<2x32xf32>
    %88 = arith.addf %86, %87 : vector<2x32xf32>
    %89 = arith.negf %88 : vector<2x32xf32>
    %90 = math.exp %89 : vector<2x32xf32>
    %cst_27 = arith.constant 1.000000e+00 : f32
    %91 = vector.broadcast %cst_27 : f32 to vector<2x32xf32>
    %92 = arith.addf %91, %90 : vector<2x32xf32>
    %93 = arith.divf %91, %92 : vector<2x32xf32>
    %94 = vector.extract_strided_slice %84 {offsets = [0, 32], sizes = [2, 32], strides = [1, 1]} : vector<2x96xf32> to vector<2x32xf32>
    %95 = vector.extract_strided_slice %85 {offsets = [0, 32], sizes = [2, 32], strides = [1, 1]} : vector<2x96xf32> to vector<2x32xf32>
    %96 = arith.addf %94, %95 : vector<2x32xf32>
    %97 = arith.negf %96 : vector<2x32xf32>
    %98 = math.exp %97 : vector<2x32xf32>
    %cst_28 = arith.constant 1.000000e+00 : f32
    %99 = vector.broadcast %cst_28 : f32 to vector<2x32xf32>
    %100 = arith.addf %99, %98 : vector<2x32xf32>
    %101 = arith.divf %99, %100 : vector<2x32xf32>
    %102 = vector.extract_strided_slice %84 {offsets = [0, 64], sizes = [2, 32], strides = [1, 1]} : vector<2x96xf32> to vector<2x32xf32>
    %103 = vector.extract_strided_slice %85 {offsets = [0, 64], sizes = [2, 32], strides = [1, 1]} : vector<2x96xf32> to vector<2x32xf32>
    %104 = vector.broadcast %9 : vector<1x32xf32> to vector<2x32xf32>
    %105 = arith.addf %103, %104 : vector<2x32xf32>
    %106 = arith.mulf %93, %105 : vector<2x32xf32>
    %107 = arith.addf %102, %106 : vector<2x32xf32>
    %108 = math.tanh %107 : vector<2x32xf32>
    %cst_29 = arith.constant 1.000000e+00 : f32
    %109 = vector.broadcast %cst_29 : f32 to vector<2x32xf32>
    %110 = arith.subf %109, %101 : vector<2x32xf32>
    %111 = arith.mulf %110, %108 : vector<2x32xf32>
    %112 = arith.mulf %101, %83 : vector<2x32xf32>
    %113 = arith.addf %111, %112 : vector<2x32xf32>
    %114 = vector.extract_strided_slice %22 {offsets = [6, 0], sizes = [2, 96], strides = [1, 1]} : vector<16x96xf32> to vector<2x96xf32>
    %cst_30 = arith.constant dense<0.000000e+00> : vector<2x96xf32>
    %115 = tpu.matmul %113, %1, %cst_30 {dimension_numbers = #tpu.dot_dimension_numbers<[1], [0], [0], [1], [0, 0, 1, 1], [], []>} : vector<2x32xf32>, vector<32x96xf32>, vector<2x96xf32> -> vector<2x96xf32>
    %116 = vector.extract_strided_slice %114 {offsets = [0, 0], sizes = [2, 32], strides = [1, 1]} : vector<2x96xf32> to vector<2x32xf32>
    %117 = vector.extract_strided_slice %115 {offsets = [0, 0], sizes = [2, 32], strides = [1, 1]} : vector<2x96xf32> to vector<2x32xf32>
    %118 = arith.addf %116, %117 : vector<2x32xf32>
    %119 = arith.negf %118 : vector<2x32xf32>
    %120 = math.exp %119 : vector<2x32xf32>
    %cst_31 = arith.constant 1.000000e+00 : f32
    %121 = vector.broadcast %cst_31 : f32 to vector<2x32xf32>
    %122 = arith.addf %121, %120 : vector<2x32xf32>
    %123 = arith.divf %121, %122 : vector<2x32xf32>
    %124 = vector.extract_strided_slice %114 {offsets = [0, 32], sizes = [2, 32], strides = [1, 1]} : vector<2x96xf32> to vector<2x32xf32>
    %125 = vector.extract_strided_slice %115 {offsets = [0, 32], sizes = [2, 32], strides = [1, 1]} : vector<2x96xf32> to vector<2x32xf32>
    %126 = arith.addf %124, %125 : vector<2x32xf32>
    %127 = arith.negf %126 : vector<2x32xf32>
    %128 = math.exp %127 : vector<2x32xf32>
    %cst_32 = arith.constant 1.000000e+00 : f32
    %129 = vector.broadcast %cst_32 : f32 to vector<2x32xf32>
    %130 = arith.addf %129, %128 : vector<2x32xf32>
    %131 = arith.divf %129, %130 : vector<2x32xf32>
    %132 = vector.extract_strided_slice %114 {offsets = [0, 64], sizes = [2, 32], strides = [1, 1]} : vector<2x96xf32> to vector<2x32xf32>
    %133 = vector.extract_strided_slice %115 {offsets = [0, 64], sizes = [2, 32], strides = [1, 1]} : vector<2x96xf32> to vector<2x32xf32>
    %134 = vector.broadcast %9 : vector<1x32xf32> to vector<2x32xf32>
    %135 = arith.addf %133, %134 : vector<2x32xf32>
    %136 = arith.mulf %123, %135 : vector<2x32xf32>
    %137 = arith.addf %132, %136 : vector<2x32xf32>
    %138 = math.tanh %137 : vector<2x32xf32>
    %cst_33 = arith.constant 1.000000e+00 : f32
    %139 = vector.broadcast %cst_33 : f32 to vector<2x32xf32>
    %140 = arith.subf %139, %131 : vector<2x32xf32>
    %141 = arith.mulf %140, %138 : vector<2x32xf32>
    %142 = arith.mulf %131, %113 : vector<2x32xf32>
    %143 = arith.addf %141, %142 : vector<2x32xf32>
    %144 = vector.extract_strided_slice %22 {offsets = [8, 0], sizes = [2, 96], strides = [1, 1]} : vector<16x96xf32> to vector<2x96xf32>
    %cst_34 = arith.constant dense<0.000000e+00> : vector<2x96xf32>
    %145 = tpu.matmul %143, %1, %cst_34 {dimension_numbers = #tpu.dot_dimension_numbers<[1], [0], [0], [1], [0, 0, 1, 1], [], []>} : vector<2x32xf32>, vector<32x96xf32>, vector<2x96xf32> -> vector<2x96xf32>
    %146 = vector.extract_strided_slice %144 {offsets = [0, 0], sizes = [2, 32], strides = [1, 1]} : vector<2x96xf32> to vector<2x32xf32>
    %147 = vector.extract_strided_slice %145 {offsets = [0, 0], sizes = [2, 32], strides = [1, 1]} : vector<2x96xf32> to vector<2x32xf32>
    %148 = arith.addf %146, %147 : vector<2x32xf32>
    %149 = arith.negf %148 : vector<2x32xf32>
    %150 = math.exp %149 : vector<2x32xf32>
    %cst_35 = arith.constant 1.000000e+00 : f32
    %151 = vector.broadcast %cst_35 : f32 to vector<2x32xf32>
    %152 = arith.addf %151, %150 : vector<2x32xf32>
    %153 = arith.divf %151, %152 : vector<2x32xf32>
    %154 = vector.extract_strided_slice %144 {offsets = [0, 32], sizes = [2, 32], strides = [1, 1]} : vector<2x96xf32> to vector<2x32xf32>
    %155 = vector.extract_strided_slice %145 {offsets = [0, 32], sizes = [2, 32], strides = [1, 1]} : vector<2x96xf32> to vector<2x32xf32>
    %156 = arith.addf %154, %155 : vector<2x32xf32>
    %157 = arith.negf %156 : vector<2x32xf32>
    %158 = math.exp %157 : vector<2x32xf32>
    %cst_36 = arith.constant 1.000000e+00 : f32
    %159 = vector.broadcast %cst_36 : f32 to vector<2x32xf32>
    %160 = arith.addf %159, %158 : vector<2x32xf32>
    %161 = arith.divf %159, %160 : vector<2x32xf32>
    %162 = vector.extract_strided_slice %144 {offsets = [0, 64], sizes = [2, 32], strides = [1, 1]} : vector<2x96xf32> to vector<2x32xf32>
    %163 = vector.extract_strided_slice %145 {offsets = [0, 64], sizes = [2, 32], strides = [1, 1]} : vector<2x96xf32> to vector<2x32xf32>
    %164 = vector.broadcast %9 : vector<1x32xf32> to vector<2x32xf32>
    %165 = arith.addf %163, %164 : vector<2x32xf32>
    %166 = arith.mulf %153, %165 : vector<2x32xf32>
    %167 = arith.addf %162, %166 : vector<2x32xf32>
    %168 = math.tanh %167 : vector<2x32xf32>
    %cst_37 = arith.constant 1.000000e+00 : f32
    %169 = vector.broadcast %cst_37 : f32 to vector<2x32xf32>
    %170 = arith.subf %169, %161 : vector<2x32xf32>
    %171 = arith.mulf %170, %168 : vector<2x32xf32>
    %172 = arith.mulf %161, %143 : vector<2x32xf32>
    %173 = arith.addf %171, %172 : vector<2x32xf32>
    %174 = vector.extract_strided_slice %22 {offsets = [10, 0], sizes = [2, 96], strides = [1, 1]} : vector<16x96xf32> to vector<2x96xf32>
    %cst_38 = arith.constant dense<0.000000e+00> : vector<2x96xf32>
    %175 = tpu.matmul %173, %1, %cst_38 {dimension_numbers = #tpu.dot_dimension_numbers<[1], [0], [0], [1], [0, 0, 1, 1], [], []>} : vector<2x32xf32>, vector<32x96xf32>, vector<2x96xf32> -> vector<2x96xf32>
    %176 = vector.extract_strided_slice %174 {offsets = [0, 0], sizes = [2, 32], strides = [1, 1]} : vector<2x96xf32> to vector<2x32xf32>
    %177 = vector.extract_strided_slice %175 {offsets = [0, 0], sizes = [2, 32], strides = [1, 1]} : vector<2x96xf32> to vector<2x32xf32>
    %178 = arith.addf %176, %177 : vector<2x32xf32>
    %179 = arith.negf %178 : vector<2x32xf32>
    %180 = math.exp %179 : vector<2x32xf32>
    %cst_39 = arith.constant 1.000000e+00 : f32
    %181 = vector.broadcast %cst_39 : f32 to vector<2x32xf32>
    %182 = arith.addf %181, %180 : vector<2x32xf32>
    %183 = arith.divf %181, %182 : vector<2x32xf32>
    %184 = vector.extract_strided_slice %174 {offsets = [0, 32], sizes = [2, 32], strides = [1, 1]} : vector<2x96xf32> to vector<2x32xf32>
    %185 = vector.extract_strided_slice %175 {offsets = [0, 32], sizes = [2, 32], strides = [1, 1]} : vector<2x96xf32> to vector<2x32xf32>
    %186 = arith.addf %184, %185 : vector<2x32xf32>
    %187 = arith.negf %186 : vector<2x32xf32>
    %188 = math.exp %187 : vector<2x32xf32>
    %cst_40 = arith.constant 1.000000e+00 : f32
    %189 = vector.broadcast %cst_40 : f32 to vector<2x32xf32>
    %190 = arith.addf %189, %188 : vector<2x32xf32>
    %191 = arith.divf %189, %190 : vector<2x32xf32>
    %192 = vector.extract_strided_slice %174 {offsets = [0, 64], sizes = [2, 32], strides = [1, 1]} : vector<2x96xf32> to vector<2x32xf32>
    %193 = vector.extract_strided_slice %175 {offsets = [0, 64], sizes = [2, 32], strides = [1, 1]} : vector<2x96xf32> to vector<2x32xf32>
    %194 = vector.broadcast %9 : vector<1x32xf32> to vector<2x32xf32>
    %195 = arith.addf %193, %194 : vector<2x32xf32>
    %196 = arith.mulf %183, %195 : vector<2x32xf32>
    %197 = arith.addf %192, %196 : vector<2x32xf32>
    %198 = math.tanh %197 : vector<2x32xf32>
    %cst_41 = arith.constant 1.000000e+00 : f32
    %199 = vector.broadcast %cst_41 : f32 to vector<2x32xf32>
    %200 = arith.subf %199, %191 : vector<2x32xf32>
    %201 = arith.mulf %200, %198 : vector<2x32xf32>
    %202 = arith.mulf %191, %173 : vector<2x32xf32>
    %203 = arith.addf %201, %202 : vector<2x32xf32>
    %204 = vector.extract_strided_slice %22 {offsets = [12, 0], sizes = [2, 96], strides = [1, 1]} : vector<16x96xf32> to vector<2x96xf32>
    %cst_42 = arith.constant dense<0.000000e+00> : vector<2x96xf32>
    %205 = tpu.matmul %203, %1, %cst_42 {dimension_numbers = #tpu.dot_dimension_numbers<[1], [0], [0], [1], [0, 0, 1, 1], [], []>} : vector<2x32xf32>, vector<32x96xf32>, vector<2x96xf32> -> vector<2x96xf32>
    %206 = vector.extract_strided_slice %204 {offsets = [0, 0], sizes = [2, 32], strides = [1, 1]} : vector<2x96xf32> to vector<2x32xf32>
    %207 = vector.extract_strided_slice %205 {offsets = [0, 0], sizes = [2, 32], strides = [1, 1]} : vector<2x96xf32> to vector<2x32xf32>
    %208 = arith.addf %206, %207 : vector<2x32xf32>
    %209 = arith.negf %208 : vector<2x32xf32>
    %210 = math.exp %209 : vector<2x32xf32>
    %cst_43 = arith.constant 1.000000e+00 : f32
    %211 = vector.broadcast %cst_43 : f32 to vector<2x32xf32>
    %212 = arith.addf %211, %210 : vector<2x32xf32>
    %213 = arith.divf %211, %212 : vector<2x32xf32>
    %214 = vector.extract_strided_slice %204 {offsets = [0, 32], sizes = [2, 32], strides = [1, 1]} : vector<2x96xf32> to vector<2x32xf32>
    %215 = vector.extract_strided_slice %205 {offsets = [0, 32], sizes = [2, 32], strides = [1, 1]} : vector<2x96xf32> to vector<2x32xf32>
    %216 = arith.addf %214, %215 : vector<2x32xf32>
    %217 = arith.negf %216 : vector<2x32xf32>
    %218 = math.exp %217 : vector<2x32xf32>
    %cst_44 = arith.constant 1.000000e+00 : f32
    %219 = vector.broadcast %cst_44 : f32 to vector<2x32xf32>
    %220 = arith.addf %219, %218 : vector<2x32xf32>
    %221 = arith.divf %219, %220 : vector<2x32xf32>
    %222 = vector.extract_strided_slice %204 {offsets = [0, 64], sizes = [2, 32], strides = [1, 1]} : vector<2x96xf32> to vector<2x32xf32>
    %223 = vector.extract_strided_slice %205 {offsets = [0, 64], sizes = [2, 32], strides = [1, 1]} : vector<2x96xf32> to vector<2x32xf32>
    %224 = vector.broadcast %9 : vector<1x32xf32> to vector<2x32xf32>
    %225 = arith.addf %223, %224 : vector<2x32xf32>
    %226 = arith.mulf %213, %225 : vector<2x32xf32>
    %227 = arith.addf %222, %226 : vector<2x32xf32>
    %228 = math.tanh %227 : vector<2x32xf32>
    %cst_45 = arith.constant 1.000000e+00 : f32
    %229 = vector.broadcast %cst_45 : f32 to vector<2x32xf32>
    %230 = arith.subf %229, %221 : vector<2x32xf32>
    %231 = arith.mulf %230, %228 : vector<2x32xf32>
    %232 = arith.mulf %221, %203 : vector<2x32xf32>
    %233 = arith.addf %231, %232 : vector<2x32xf32>
    %234 = vector.extract_strided_slice %22 {offsets = [14, 0], sizes = [2, 96], strides = [1, 1]} : vector<16x96xf32> to vector<2x96xf32>
    %cst_46 = arith.constant dense<0.000000e+00> : vector<2x96xf32>
    %235 = tpu.matmul %233, %1, %cst_46 {dimension_numbers = #tpu.dot_dimension_numbers<[1], [0], [0], [1], [0, 0, 1, 1], [], []>} : vector<2x32xf32>, vector<32x96xf32>, vector<2x96xf32> -> vector<2x96xf32>
    %236 = vector.extract_strided_slice %234 {offsets = [0, 0], sizes = [2, 32], strides = [1, 1]} : vector<2x96xf32> to vector<2x32xf32>
    %237 = vector.extract_strided_slice %235 {offsets = [0, 0], sizes = [2, 32], strides = [1, 1]} : vector<2x96xf32> to vector<2x32xf32>
    %238 = arith.addf %236, %237 : vector<2x32xf32>
    %239 = arith.negf %238 : vector<2x32xf32>
    %240 = math.exp %239 : vector<2x32xf32>
    %cst_47 = arith.constant 1.000000e+00 : f32
    %241 = vector.broadcast %cst_47 : f32 to vector<2x32xf32>
    %242 = arith.addf %241, %240 : vector<2x32xf32>
    %243 = arith.divf %241, %242 : vector<2x32xf32>
    %244 = vector.extract_strided_slice %234 {offsets = [0, 32], sizes = [2, 32], strides = [1, 1]} : vector<2x96xf32> to vector<2x32xf32>
    %245 = vector.extract_strided_slice %235 {offsets = [0, 32], sizes = [2, 32], strides = [1, 1]} : vector<2x96xf32> to vector<2x32xf32>
    %246 = arith.addf %244, %245 : vector<2x32xf32>
    %247 = arith.negf %246 : vector<2x32xf32>
    %248 = math.exp %247 : vector<2x32xf32>
    %cst_48 = arith.constant 1.000000e+00 : f32
    %249 = vector.broadcast %cst_48 : f32 to vector<2x32xf32>
    %250 = arith.addf %249, %248 : vector<2x32xf32>
    %251 = arith.divf %249, %250 : vector<2x32xf32>
    %252 = vector.extract_strided_slice %234 {offsets = [0, 64], sizes = [2, 32], strides = [1, 1]} : vector<2x96xf32> to vector<2x32xf32>
    %253 = vector.extract_strided_slice %235 {offsets = [0, 64], sizes = [2, 32], strides = [1, 1]} : vector<2x96xf32> to vector<2x32xf32>
    %254 = vector.broadcast %9 : vector<1x32xf32> to vector<2x32xf32>
    %255 = arith.addf %253, %254 : vector<2x32xf32>
    %256 = arith.mulf %243, %255 : vector<2x32xf32>
    %257 = arith.addf %252, %256 : vector<2x32xf32>
    %258 = math.tanh %257 : vector<2x32xf32>
    %cst_49 = arith.constant 1.000000e+00 : f32
    %259 = vector.broadcast %cst_49 : f32 to vector<2x32xf32>
    %260 = arith.subf %259, %251 : vector<2x32xf32>
    %261 = arith.mulf %260, %258 : vector<2x32xf32>
    %262 = arith.mulf %251, %233 : vector<2x32xf32>
    %263 = arith.addf %261, %262 : vector<2x32xf32>
    %264 = vector.shape_cast %53 : vector<2x32xf32> to vector<2x1x32xf32>
    %265 = vector.shape_cast %83 : vector<2x32xf32> to vector<2x1x32xf32>
    %266 = vector.shape_cast %113 : vector<2x32xf32> to vector<2x1x32xf32>
    %267 = vector.shape_cast %143 : vector<2x32xf32> to vector<2x1x32xf32>
    %268 = vector.shape_cast %173 : vector<2x32xf32> to vector<2x1x32xf32>
    %269 = vector.shape_cast %203 : vector<2x32xf32> to vector<2x1x32xf32>
    %270 = vector.shape_cast %233 : vector<2x32xf32> to vector<2x1x32xf32>
    %271 = vector.shape_cast %263 : vector<2x32xf32> to vector<2x1x32xf32>
    %272 = tpu.concatenate %264, %265, %266, %267, %268, %269, %270, %271 in 1 : vector<2x1x32xf32>, vector<2x1x32xf32>, vector<2x1x32xf32>, vector<2x1x32xf32>, vector<2x1x32xf32>, vector<2x1x32xf32>, vector<2x1x32xf32>, vector<2x1x32xf32> -> vector<2x8x32xf32>
    %c0_50 = arith.constant 0 : index
    %c0_51 = arith.constant 0 : index
    %273 = vector.load %arg1[%c0_50, %c0_51] : memref<2x1xi32, #tpu.memory_space<vmem>>, vector<2x1xi32>
    %274 = tpu.iota {dimensions = array<i32: 1>} : vector<2x64xi32>
    %275 = vector.broadcast %273 : vector<2x1xi32> to vector<2x64xi32>
    %276 = arith.cmpi eq, %275, %274 : vector<2x64xi32>
    %277 = arith.extui %276 : vector<2x64xi1> to vector<2x64xi32>
    %278 = arith.sitofp %277 : vector<2x64xi32> to vector<2x64xf32>
    %cst_52 = arith.constant dense<0.000000e+00> : vector<2x16xf32>
    %279 = tpu.matmul %278, %6, %cst_52 {dimension_numbers = #tpu.dot_dimension_numbers<[1], [0], [0], [1], [0, 0, 1, 1], [], []>} : vector<2x64xf32>, vector<64x16xf32>, vector<2x16xf32> -> vector<2x16xf32>
    %280 = vector.shape_cast %263 : vector<2x32xf32> to vector<2x1x32xf32>
    %281 = vector.broadcast %280 : vector<2x1x32xf32> to vector<2x8x32xf32>
    %282 = arith.mulf %281, %272 : vector<2x8x32xf32>
    %cst_53 = arith.constant dense<0.000000e+00> : vector<2x8xf32>
    %283 = vector.multi_reduction <add>, %282, %cst_53 [2] : vector<2x8x32xf32> to vector<2x8xf32>
    %cst_54 = arith.constant dense<0xFF800000> : vector<2xf32>
    %284 = vector.multi_reduction <maximumf>, %283, %cst_54 [1] : vector<2x8xf32> to vector<2xf32>
    %285 = vector.shape_cast %284 : vector<2xf32> to vector<2x1xf32>
    %286 = vector.broadcast %285 : vector<2x1xf32> to vector<2x8xf32>
    %287 = arith.subf %283, %286 : vector<2x8xf32>
    %288 = math.exp %287 : vector<2x8xf32>
    %cst_55 = arith.constant dense<0.000000e+00> : vector<2xf32>
    %289 = vector.multi_reduction <add>, %288, %cst_55 [1] : vector<2x8xf32> to vector<2xf32>
    %290 = vector.shape_cast %289 : vector<2xf32> to vector<2x1xf32>
    %291 = tpu.reciprocal %290 {approx = true} : vector<2x1xf32> -> vector<2x1xf32>
    %292 = vector.broadcast %291 : vector<2x1xf32> to vector<2x8xf32>
    %293 = arith.mulf %288, %292 : vector<2x8xf32>
    %294 = vector.shape_cast %293 : vector<2x8xf32> to vector<2x8x1xf32>
    %295 = vector.broadcast %294 : vector<2x8x1xf32> to vector<2x8x32xf32>
    %296 = arith.mulf %295, %272 : vector<2x8x32xf32>
    %cst_56 = arith.constant dense<0.000000e+00> : vector<2x32xf32>
    %297 = vector.multi_reduction <add>, %296, %cst_56 [1] : vector<2x8x32xf32> to vector<2x32xf32>
    %cst_57 = arith.constant dense<0.000000e+00> : vector<2x96xf32>
    %298 = tpu.matmul %279, %2, %cst_57 {dimension_numbers = #tpu.dot_dimension_numbers<[1], [0], [0], [1], [0, 0, 1, 1], [], []>} : vector<2x16xf32>, vector<16x96xf32>, vector<2x96xf32> -> vector<2x96xf32>
    %cst_58 = arith.constant dense<0.000000e+00> : vector<2x96xf32>
    %299 = tpu.matmul %297, %3, %cst_58 {dimension_numbers = #tpu.dot_dimension_numbers<[1], [0], [0], [1], [0, 0, 1, 1], [], []>} : vector<2x32xf32>, vector<32x96xf32>, vector<2x96xf32> -> vector<2x96xf32>
    %300 = arith.addf %298, %299 : vector<2x96xf32>
    %301 = vector.broadcast %10 : vector<1x96xf32> to vector<2x96xf32>
    %302 = arith.addf %300, %301 : vector<2x96xf32>
    %cst_59 = arith.constant dense<0.000000e+00> : vector<2x96xf32>
    %303 = tpu.matmul %263, %4, %cst_59 {dimension_numbers = #tpu.dot_dimension_numbers<[1], [0], [0], [1], [0, 0, 1, 1], [], []>} : vector<2x32xf32>, vector<32x96xf32>, vector<2x96xf32> -> vector<2x96xf32>
    %304 = vector.extract_strided_slice %302 {offsets = [0, 0], sizes = [2, 32], strides = [1, 1]} : vector<2x96xf32> to vector<2x32xf32>
    %305 = vector.extract_strided_slice %303 {offsets = [0, 0], sizes = [2, 32], strides = [1, 1]} : vector<2x96xf32> to vector<2x32xf32>
    %306 = arith.addf %304, %305 : vector<2x32xf32>
    %307 = arith.negf %306 : vector<2x32xf32>
    %308 = math.exp %307 : vector<2x32xf32>
    %cst_60 = arith.constant 1.000000e+00 : f32
    %309 = vector.broadcast %cst_60 : f32 to vector<2x32xf32>
    %310 = arith.addf %309, %308 : vector<2x32xf32>
    %311 = arith.divf %309, %310 : vector<2x32xf32>
    %312 = vector.extract_strided_slice %302 {offsets = [0, 32], sizes = [2, 32], strides = [1, 1]} : vector<2x96xf32> to vector<2x32xf32>
    %313 = vector.extract_strided_slice %303 {offsets = [0, 32], sizes = [2, 32], strides = [1, 1]} : vector<2x96xf32> to vector<2x32xf32>
    %314 = arith.addf %312, %313 : vector<2x32xf32>
    %315 = arith.negf %314 : vector<2x32xf32>
    %316 = math.exp %315 : vector<2x32xf32>
    %cst_61 = arith.constant 1.000000e+00 : f32
    %317 = vector.broadcast %cst_61 : f32 to vector<2x32xf32>
    %318 = arith.addf %317, %316 : vector<2x32xf32>
    %319 = arith.divf %317, %318 : vector<2x32xf32>
    %320 = vector.extract_strided_slice %302 {offsets = [0, 64], sizes = [2, 32], strides = [1, 1]} : vector<2x96xf32> to vector<2x32xf32>
    %321 = vector.extract_strided_slice %303 {offsets = [0, 64], sizes = [2, 32], strides = [1, 1]} : vector<2x96xf32> to vector<2x32xf32>
    %322 = vector.broadcast %11 : vector<1x32xf32> to vector<2x32xf32>
    %323 = arith.addf %321, %322 : vector<2x32xf32>
    %324 = arith.mulf %311, %323 : vector<2x32xf32>
    %325 = arith.addf %320, %324 : vector<2x32xf32>
    %326 = math.tanh %325 : vector<2x32xf32>
    %cst_62 = arith.constant 1.000000e+00 : f32
    %327 = vector.broadcast %cst_62 : f32 to vector<2x32xf32>
    %328 = arith.subf %327, %319 : vector<2x32xf32>
    %329 = arith.mulf %328, %326 : vector<2x32xf32>
    %330 = arith.mulf %319, %263 : vector<2x32xf32>
    %331 = arith.addf %329, %330 : vector<2x32xf32>
    %cst_63 = arith.constant dense<0.000000e+00> : vector<2x64xf32>
    %332 = tpu.matmul %331, %7, %cst_63 {dimension_numbers = #tpu.dot_dimension_numbers<[1], [0], [0], [1], [0, 0, 1, 1], [], []>} : vector<2x32xf32>, vector<32x64xf32>, vector<2x64xf32> -> vector<2x64xf32>
    %333 = vector.broadcast %12 : vector<1x64xf32> to vector<2x64xf32>
    %334 = arith.addf %332, %333 : vector<2x64xf32>
    %cst_64 = arith.constant 0.000000e+00 : f32
    %335 = vector.broadcast %cst_64 : f32 to vector<2x24xf32>
    %336 = tpu.concatenate %334, %331, %293, %335 in 1 : vector<2x64xf32>, vector<2x32xf32>, vector<2x8xf32>, vector<2x24xf32> -> vector<2x128xf32>
    %cst_65 = arith.constant 0.000000e+00 : f32
    %337 = vector.broadcast %cst_65 : f32 to vector<6x128xf32>
    %338 = tpu.concatenate %336, %337 in 0 : vector<2x128xf32>, vector<6x128xf32> -> vector<8x128xf32>
    %c0_66 = arith.constant 0 : index
    %c0_67 = arith.constant 0 : index
    %339 = vector.load %arg4[%c0_66, %c0_67] : memref<8x128xf32, #tpu.memory_space<vmem>>, vector<8x128xf32>
    tpu.vector_store %arg4[%c0_66, %c0_67], %338 {strides = array<i32>} : memref<8x128xf32, #tpu.memory_space<vmem>>, vector<8x128xf32>,
    return
  }
}

</mosaic_0001>

<bundles_post_ra>
// kernel: seq2seq_forward.1
= control target key start
LH: loop header
LB: loop body
LE: loop exit
PB: predicated region body
PF: predicated region fallthrough
CT: control target
= control target key end

     0   :  { %9 = vsyncpa [#allocation3], 0  ;;  %s2451_s15 = smov [#allocation2]   ;;  %s2782_s0 = inlined_call_operand.vmem [shape: s32[16,1], index: 0, kind: input, shape index: {}]   ;;  %s2783_s1 = inlined_call_operand.vmem [shape: s32[2,1], index: 1, kind: input, shape index: {}]   ;;  %s2784_s2 = inlined_call_operand.hbm [shape: f32[288,96], index: 2, kind: input, shape index: {}]   ;;  %s2785_s3 = inlined_call_operand.vmem [shape: f32[8,96], index: 3, kind: input, shape index: {}]   ;;  %s2786_s4 = inlined_call_operand.vmem [shape: f32[8,128], index: 4, kind: output, shape index: {}]  }
   0x1   :  { %s19_s16 = sshll.u32 %s2451_s15, 4  ;;  %s2427_s19 = scalar_lea.hbm %s2784_s2, 4608  ;;  %s20_s16 = int_to_ptr.vmem [resolvable:$true] %s19_s16 }
   0x2   :  { %p2428_p0 = scmp.ne.s32.totalorder %s2784_s2, %s2427_s19  ;;  %p2431_p1 = scmp.lt.u32.totalorder %s2427_s19, %s2784_s2 }
   0x4   :  { %p2433_p2 = pnand %p2431_p1, %p2428_p0 }
   0x6   :  { %2436 = shalt.err (!%p2433_p2)
}
   0x7   :  { %s2437_s24 = scalar_lea.vmem %s20_s16, 4608  ;;  %p2442_p4 = scmp.lt.s32.totalorder %s20_s16, %s20_s16 }
   0x8   :  { %p2438_p3 = scmp.ne.s32.totalorder %s20_s16, %s2437_s24  ;;  %p2443_p5 = scmp.lt.s32.totalorder %s2437_s24, %s2437_s24 }
   0xa   :  { %p2444_p6 = por %p2443_p5, %p2442_p4 }
   0xc   :  { %p2445_p7 = pnand %p2444_p6, %p2438_p3 }
   0xe   :  { %2448 = shalt.err (!%p2445_p7)
}
   0xf   :  { %s2452_s25 = smov 128   ;;  %s2453_s26 = smov 8  }
  0x10   :  { %25 = dma.hbm_to_vmem [thread:$0]  %s2784_s2, 4608, %s20_s16, [#allocation3], %s2452_s25, %s2452_s25, %s2453_s26  }
  0x11   :  { %2449 = dma.done.wait [#allocation3], 4608  }
  0x12   :  { %2450 = vsyncadd [#allocation3], 4294962688  ;;  %v2454_v0 = vmov 0   ;;  %v72_v1 = vld [vmem:[%s2782_s0] sm:$0xff]  ;;  %v48_v3 = vld [vmem:[#allocation2 + $0x88] sm:$0xff]  ;;  %v74_v18 = vlaneseq  ;;  %vm88_vm0 = vcmask 523264  }
  0x13   :  { %2365 = vset.pattern.permute.xlu0 %v2454_v0  ;;  %2366 = vset.pattern.permute.xlu1 %v2454_v0  ;;  %v47_v2 = vld [vmem:[#allocation2 + $0x80] sm:$0xff]  ;;  %v49_v4 = vld [vmem:[#allocation2 + $0x90] sm:$0xff]  ;;  %v50_v5 = vld [vmem:[#allocation2 + $0x98] sm:$0xff]  ;;  %v2455_v21 = vmov 0.0   ;;  %v2456_v28 = vmov 0.0|0.0   ;;  %vm2457_vm3 = vmmov 0  }
  0x14   :  { %77 = vperm.xlu0 %2365, %v72_v1   ;;  %v73_v6 = vld [vmem:[%s2782_s0 + $0x8] sm:$0xff]  ;;  %v2253_v7 = vpack.c.bf16 %v48_v3, %v47_v2  ;;  %v2257_v8 = vpack.c.bf16 %v50_v5, %v49_v4  ;;  %v51_v9 = vld [vmem:[#allocation2 + $0xa0] sm:$0xff]  ;;  %v53_v12 = vld [vmem:[#allocation2 + $0xb0] sm:$0xff]  ;;  %v2506_v19 = vand.u32 127, %v74_v18  ;;  %s2458_s7 = smov 64   ;;  %vm174_vm4 = vcmask 130048  }
  0x15   :  { %v52_v10 = vld [vmem:[#allocation2 + $0xa8] sm:$0xff]  ;;  %v54_v13 = vld [vmem:[#allocation2 + $0xb8] sm:$0xff]  ;;  %v31_v14 = vld [vmem:[#allocation2] sm:$0xff]  ;;  %s2459_s10 = smov 96   ;;  %vm256_vm5 = vcmask 261120   ;;  %vm1382_vm6 = vcmask 1040384  }
  0x16   :  { %2254 = vmatprep.subr.bf16.mxu0 %v2253_v7  ;;  %v2261_v11 = vpack.c.bf16 %v52_v10, %v51_v9  ;;  %v32_v15 = vld [vmem:[#allocation2 + $0x8] sm:$0xff]  ;;  %v2265_v17 = vpack.c.bf16 %v54_v13, %v53_v12  ;;  %v33_v25 = vld [vmem:[#allocation2 + $0x10] sm:$0xff]  ;;  %v34_v26 = vld [vmem:[#allocation2 + $0x18] sm:$0xff]  ;;  %vm1385_vm7 = vcmask 1041408   ;;  %vm1388_vm8 = vcmask 1042432   ;;  %s2461_s16 = smov 32  }
  0x17   :  { %2256 = vmatpush3.bf16.msra.mxu0 %v2253_v7  ;;  %v2269_v16 = vpack.c.bf16 %v32_v15, %v31_v14  ;;  %v2514_v27 = vpack.c.bf16 %v34_v26, %v33_v25  ;;  %v35_v29 = vld [vmem:[#allocation2 + $0x20] sm:$0xff]  ;;  %v36_v30 = vld [vmem:[#allocation2 + $0x28] sm:$0xff]  ;;  %v2575_v14 = vshrl.u32 %v74_v18, 7  ;;  %vm1391_vm9 = vcmask 1043456  }
  0x18   :  { %80 = vperm.xlu0 %2365, %v73_v6   ;;  %2258 = vmatprep.subr.bf16.mxu0 %v2257_v8  ;;  %v2520_v31 = vpack.c.bf16 %v36_v30, %v35_v29  ;;  %v1974_v32 = vld [vmem:[%s2785_s3 + $0x1] ss:$0 sm:$0xff]  ;;  %v1970_v35 = vld [vmem:[%s2785_s3] ss:$0 sm:$0xff]  ;;  %vm1394_vm10 = vcmask 1044480   ;;  %vm1397_vm11 = vcmask 1045504  }
  0x19   :  { %2270 = vmatprep.subr.bf16.mxu1 %v2269_v16  ;;  %342 = vrot.lane.b32.xlu1 %v1974_v32, %s2458_s7  ;;  %v2583_v30 = vsub.s32 0, %v2575_v14  ;;  %vm1400_vm12 = vcmask 1046528   ;;  %vm1509_vm13 = vcmask 1041409   ;;  %vm1512_vm14 = vcmask 58368  }
  0x1a   :  { %2272 = vmatpush3.bf16.msra.mxu1 %v2269_v16 }
  0x1b   :  { %2260 = vmatpush3.bf16.msra.mxu0 %v2257_v8  ;;  %2273 = vmatprep.subr.bf16.mxu1 %v2456_v28 }
  0x1c   :  { %2262 = vmatprep.subr.bf16.mxu0 %v2261_v11 }
  0x1f   :  { %2264 = vmatpush3.bf16.msra.mxu0 %v2261_v11  ;;  %v2460_v11 = vmov 1966171168  }
  0x20   :  { %2266 = vmatprep.subr.bf16.mxu0 %v2265_v17  ;;  %v1122_v12 = vunpack.c.l.s4 %v2460_v11 }
  0x22   :  { %v1123_v13 = vunpack.c.0.s8 %v1122_v12 }
  0x23   :  { %2268 = vmatpush3.bf16.msra.mxu0 %v2265_v17 }
  0x24   :  { %2285 = vmatprep.subr.bf16.mxu0 %v2456_v28 }
  0x8b   :  { %v2550_v39 = vpop.permute.xlu1 %342 }
  0x93   :  { %v78_v20 = vpop.permute.xlu0 %77 }
  0x94   :  { %vm82_vm1 = vcmp.eq.s32.totalorder %v78_v20, %v2506_v19  ;;  %v2578_v20 = vsub.s32 %v1123_v13, %v2575_v14 }
  0x95   :  { %v1966_v22 = vsel %vm82_vm1, 1.0, %v2455_v21  ;;  %vm1580_vm1 = vcmask 523520  }
  0x96   :  { %2096 = vmatprep.mubr.msk.f32.mxu0 %vm88_vm0, %v1966_v22 }
  0x97   :  { %v81_v23 = vpop.permute.xlu0 %80 }
  0x98   :  { %vm83_vm2 = vcmp.eq.s32.totalorder %v81_v23, %v2506_v19 }
  0x99   :  { %v1967_v24 = vsel %vm83_vm2, 1.0, %v2455_v21  ;;  %vm1955_vm2 = vcmask 785408  }
  0x9a   :  { %2097 = vmatmul.mubr.msk.f32.vlgmr.msra.gmra.mrb[0].mxu0 %vm88_vm0, %v1967_v24 }
  0x9b   :  { %2287 = vmatpush3.bf16.msra.mxu0 %v2514_v27  ;;  %2136 = vmatprep.mubr.msk.f32.mxu0 %vm2457_vm3, %v2455_v21 }
  0x9c   :  { %2288 = vmatprep.subr.bf16.mxu0 %v2456_v28 }
  0x9f   :  { %2290 = vmatpush3.bf16.msra.mxu0 %v2520_v31 }
  0xa0   :  { %2297 = vmatprep.subr.bf16.mxu0 %v2456_v28 }
 0x16d   :  { %v2098_v33 = vpop.f32.mrb[0].mxu0 }
 0x16e   :  { %v161_v34 = vpop.f32.mrb[1].mxu0 }
 0x16f   :  { %2103 = vmatprep.mubr.msk.f32.mxu1 %vm174_vm4, %v161_v34 }
 0x170   :  { %2104 = vmatmul.mubr.msk.f32.vlgmr.msra.gmra.mrb[0].mxu1 %vm174_vm4, %v2098_v33 }
 0x171   :  { %2275 = vmatpush3.bf16.msra.mxu1 %v2514_v27  ;;  %2114 = vmatprep.mubr.msk.f32.mxu1 %vm2457_vm3, %v2455_v21 }
 0x172   :  { %2276 = vmatprep.subr.bf16.mxu1 %v2456_v28 }
 0x175   :  { %2278 = vmatpush3.bf16.msra.mxu1 %v2520_v31 }
 0x176   :  { %2279 = vmatprep.subr.bf16.mxu1 %v2456_v28 }
 0x178   :  { %2115 = vmatmul.mubr.f32.vlgmr.msra.gmra.mrb[2].mxu1 %v2455_v21 }
 0x179   :  { %2281 = vmatpush3.bf16.msra.mxu1 %v2514_v27  ;;  %2125 = vmatprep.mubr.msk.f32.mxu1 %vm2457_vm3, %v2455_v21 }
 0x17a   :  { %2282 = vmatprep.subr.bf16.mxu1 %v2456_v28 }
 0x17d   :  { %2284 = vmatpush3.bf16.msra.mxu1 %v2520_v31 }
 0x17e   :  { %2291 = vmatprep.subr.bf16.mxu1 %v2456_v28 }
 0x243   :  { %v2105_v36 = vpop.f32.mrb[0].mxu1 }
 0x244   :  { %v2548_v37 = vadd.f32 %v2105_v36, %v1970_v35  ;;  %v247_v38 = vpop.f32.mrb[1].mxu1 }
 0x245   :  { %v2554_v43 = vadd.f32 %v1970_v35, %v247_v38 }
 0x24b   :  { %v326_v40 = vpop.f32.mrb[2].mxu1 }
 0x24c   :  { %v345_v41 = vadd.f32 %v2550_v39, %v326_v40  ;;  %v2116_v42 = vpop.f32.mrb[3].mxu1  ;;  %v330_v44 = vadd.f32 %v326_v40, %v2554_v43 }
 0x24e   :  { %347 = vrot.lane.b32.xlu1 %v345_v41, %s2458_s7  ;;  %v1973_v45 = vmul.f32 -1.442695, %v330_v44 }
 0x250   :  { %2367 = vpow2.f32 %v1973_v45 }
 0x25a   :  { %v2368_v46 = vpop.eup %2367 }
 0x25b   :  { %v334_v47 = vadd.f32 1.0, %v2368_v46 }
 0x25d   :  { %2369 = vrcp.f32 %v334_v47 }
 0x267   :  { %v2370_v48 = vpop.eup %2369 }
 0x268   :  { %v357_v54 = vsub.f32 1.0, %v2370_v48  ;;  %v363_v56 = vmul.f32 0.0, %v2370_v48 }
 0x2c0   :  { %v348_v49 = vpop.permute.xlu1 %347 }
 0x2c1   :  { %v350_v50 = vmul.f32 %v2370_v48, %v348_v49 }
 0x2c3   :  { %352 = vrot.lane.b32.xlu0 %v350_v50, %s2458_s7 }
 0x335   :  { %v353_v51 = vpop.permute.xlu0 %352 }
 0x336   :  { %v355_v52 = vadd.f32 %v353_v51, %v2554_v43 }
 0x338   :  { %2371 = vtanh.f32 %v355_v52 }
 0x342   :  { %v2372_v53 = vpop.eup %2371 }
 0x343   :  { %359 = vrot.lane.b32.xlu1 %v2372_v53, %s2459_s10 }
 0x3b5   :  { %v360_v55 = vpop.permute.xlu1 %359 }
 0x3b6   :  { %v362_v57 = vmul.f32 %v360_v55, %v357_v54 }
 0x3b8   :  { %v364_v58 = vadd.f32 %v363_v56, %v362_v57 }
 0x3ba   :  { %366 = vrot.lane.b32.xlu0 %v364_v58, %s2459_s10  ;;  %v469_v16 = vrot.slane %v364_v58, 6  ;;  %v1127_v25 = vrot.slane %v364_v58, %v2578_v20 }
 0x3bc   :  { %v1128_v33 = vcombine.high %v1127_v25, %v1127_v25  ;;  %v1135_v36 = vrot.slane %v1127_v25, %v2578_v20 }
 0x3be   :  { %v1142_v41 = vrot.slane %v1128_v33, %v2578_v20 }
 0x42c   :  { %v367_v59 = vpop.permute.xlu0 %366 }
 0x42d   :  { %2126 = vmatmul.mubr.msk.f32.vlgmr.msra.gmra.mrb[4].mxu1 %vm256_vm5, %v367_v59 }
 0x42e   :  { %2293 = vmatpush3.bf16.msra.mxu1 %v2514_v27  ;;  %2147 = vmatprep.mubr.msk.f32.mxu1 %vm2457_vm3, %v2455_v21 }
 0x42f   :  { %2294 = vmatprep.subr.bf16.mxu1 %v2456_v28 }
 0x432   :  { %2296 = vmatpush3.bf16.msra.mxu1 %v2520_v31 }
 0x433   :  { %2303 = vmatprep.subr.bf16.mxu1 %v2456_v28 }
 0x500   :  { %v436_v60 = vpop.f32.mrb[4].mxu1 }
 0x501   :  { %v450_v61 = vadd.f32 %v436_v60, %v2550_v39  ;;  %v2127_v62 = vpop.f32.mrb[5].mxu1  ;;  %v441_v0 = vrot.slane %v436_v60, 6 }
 0x503   :  { %v452_v63 = vrot.slane %v450_v61, 6  ;;  %v443_v1 = vadd.f32 %v441_v0, %v2554_v43 }
 0x505   :  { %453 = vrot.lane.b32.xlu1 %v452_v63, %s2458_s7  ;;  %v1976_v2 = vmul.f32 -1.442695, %v443_v1 }
 0x507   :  { %2373 = vpow2.f32 %v1976_v2 }
 0x511   :  { %v2374_v3 = vpop.eup %2373 }
 0x512   :  { %v447_v4 = vadd.f32 1.0, %v2374_v3 }
 0x514   :  { %2375 = vrcp.f32 %v447_v4 }
 0x51e   :  { %v2376_v5 = vpop.eup %2375 }
 0x51f   :  { %v463_v15 = vsub.f32 1.0, %v2376_v5  ;;  %v471_v23 = vmul.f32 %v2376_v5, %v469_v16 }
 0x577   :  { %v454_v6 = vpop.permute.xlu1 %453 }
 0x578   :  { %v456_v7 = vmul.f32 %v2376_v5, %v454_v6 }
 0x57a   :  { %458 = vrot.lane.b32.xlu0 %v456_v7, %s2458_s7 }
 0x5ec   :  { %v459_v8 = vpop.permute.xlu0 %458 }
 0x5ed   :  { %v461_v9 = vadd.f32 %v459_v8, %v2554_v43 }
 0x5ef   :  { %2377 = vtanh.f32 %v461_v9 }
 0x5f9   :  { %v2378_v10 = vpop.eup %2377 }
 0x5fa   :  { %465 = vrot.lane.b32.xlu1 %v2378_v10, %s2459_s10 }
 0x66c   :  { %v466_v17 = vpop.permute.xlu1 %465 }
 0x66d   :  { %v468_v22 = vmul.f32 %v466_v17, %v463_v15 }
 0x66f   :  { %v472_v24 = vadd.f32 %v471_v23, %v468_v22 }
 0x671   :  { %v1151_v26 = vrot.slane %v472_v24, %v2578_v20  ;;  %v474_v29 = vrot.slane %v472_v24, 2  ;;  %v578_v63 = vrot.slane %v472_v24, 6 }
 0x673   :  { %v1152_v32 = vcombine.high %v1151_v26, %v1151_v26  ;;  %v1159_v18 = vrot.slane %v1151_v26, %v2578_v20  ;;  %475 = vrot.lane.b32.xlu0 %v474_v29, %s2459_s10 }
 0x675   :  { %v1166_v34 = vrot.slane %v1152_v32, %v2578_v20  ;;  %v1167_v35 = vcombine.high %v1159_v18, %v1159_v18 }
 0x677   :  { %v1168_v38 = vcombine.high %v1166_v34, %v1166_v34  ;;  %v1315_v40 = vrot.slane %v1167_v35, %v2583_v30 }
 0x679   :  { %v1319_v42 = vrot.slane %v1168_v38, %v2583_v30  ;;  %v1383_v44 = vsel %vm1382_vm6, %v1135_v36, %v1315_v40 }
 0x67b   :  { %v1384_v45 = vsel %vm1382_vm6, %v1142_v41, %v1319_v42 }
 0x6e5   :  { %v476_v46 = vpop.permute.xlu0 %475 }
 0x6e6   :  { %2137 = vmatmul.mubr.msk.f32.vlgmr.msra.gmra.mrb[2].mxu0 %vm256_vm5, %v476_v46 }
 0x6e7   :  { %2299 = vmatpush3.bf16.msra.mxu0 %v2514_v27  ;;  %2158 = vmatprep.mubr.msk.f32.mxu0 %vm2457_vm3, %v2455_v21 }
 0x6e8   :  { %2300 = vmatprep.subr.bf16.mxu0 %v2456_v28 }
 0x6eb   :  { %2302 = vmatpush3.bf16.msra.mxu0 %v2520_v31 }
 0x6ec   :  { %2309 = vmatprep.subr.bf16.mxu0 %v2456_v28 }
 0x7b9   :  { %v545_v47 = vpop.f32.mrb[2].mxu0 }
 0x7ba   :  { %v559_v48 = vadd.f32 %v545_v47, %v2550_v39  ;;  %v2138_v49 = vpop.f32.mrb[3].mxu0  ;;  %v550_v51 = vrot.slane %v545_v47, 4 }
 0x7bc   :  { %v561_v50 = vrot.slane %v559_v48, 4  ;;  %v552_v52 = vadd.f32 %v550_v51, %v2554_v43 }
 0x7be   :  { %562 = vrot.lane.b32.xlu1 %v561_v50, %s2458_s7  ;;  %v1978_v53 = vmul.f32 -1.442695, %v552_v52 }
 0x7c0   :  { %2379 = vpow2.f32 %v1978_v53 }
 0x7ca   :  { %v2380_v54 = vpop.eup %2379 }
 0x7cb   :  { %v556_v55 = vadd.f32 1.0, %v2380_v54 }
 0x7cd   :  { %2381 = vrcp.f32 %v556_v55 }
 0x7d7   :  { %v2382_v56 = vpop.eup %2381 }
 0x7d8   :  { %v572_v62 = vsub.f32 1.0, %v2382_v56  ;;  %v580_v1 = vmul.f32 %v2382_v56, %v578_v63 }
 0x830   :  { %v563_v57 = vpop.permute.xlu1 %562 }
 0x831   :  { %v565_v58 = vmul.f32 %v2382_v56, %v563_v57 }
 0x833   :  { %567 = vrot.lane.b32.xlu0 %v565_v58, %s2458_s7 }
 0x8a5   :  { %v568_v59 = vpop.permute.xlu0 %567 }
 0x8a6   :  { %v570_v60 = vadd.f32 %v568_v59, %v2554_v43 }
 0x8a8   :  { %2383 = vtanh.f32 %v570_v60 }
 0x8b2   :  { %v2384_v61 = vpop.eup %2383 }
 0x8b3   :  { %574 = vrot.lane.b32.xlu1 %v2384_v61, %s2459_s10 }
 0x925   :  { %v575_v0 = vpop.permute.xlu1 %574 }
 0x926   :  { %v577_v2 = vmul.f32 %v575_v0, %v572_v62 }
 0x928   :  { %v581_v3 = vadd.f32 %v580_v1, %v577_v2 }
 0x92a   :  { %v1169_v4 = vcombine.high %v581_v3, %v581_v3  ;;  %v583_v5 = vrot.slane %v581_v3, 4  ;;  %v687_v41 = vrot.slane %v581_v3, 6 }
 0x92c   :  { %v1176_v6 = vrot.slane %v1169_v4, %v2578_v20  ;;  %584 = vrot.lane.b32.xlu0 %v583_v5, %s2459_s10 }
 0x92e   :  { %v1177_v7 = vcombine.high %v1176_v6, %v1176_v6  ;;  %v1184_v8 = vrot.slane %v1176_v6, %v2578_v20 }
 0x930   :  { %v1191_v9 = vrot.slane %v1177_v7, %v2578_v20  ;;  %v1325_v10 = vrot.slane %v1184_v8, %v2583_v30 }
 0x932   :  { %v1329_v11 = vrot.slane %v1191_v9, %v2583_v30  ;;  %v1386_v12 = vsel %vm1385_vm7, %v1383_v44, %v1325_v10 }
 0x934   :  { %v1387_v13 = vsel %vm1385_vm7, %v1384_v45, %v1329_v11 }
 0x99e   :  { %v585_v15 = vpop.permute.xlu0 %584 }
 0x99f   :  { %2148 = vmatmul.mubr.msk.f32.vlgmr.msra.gmra.mrb[6].mxu1 %vm256_vm5, %v585_v15 }
 0x9a0   :  { %2305 = vmatpush3.bf16.msra.mxu1 %v2514_v27  ;;  %2169 = vmatprep.mubr.msk.f32.mxu1 %vm2457_vm3, %v2455_v21 }
 0x9a1   :  { %2306 = vmatprep.subr.bf16.mxu1 %v2456_v28 }
 0x9a4   :  { %2308 = vmatpush3.bf16.msra.mxu1 %v2520_v31 }
 0x9a5   :  { %2315 = vmatprep.subr.bf16.mxu1 %v2456_v28 }
 0xa72   :  { %v654_v16 = vpop.f32.mrb[6].mxu1 }
 0xa73   :  { %v668_v17 = vadd.f32 %v654_v16, %v2550_v39  ;;  %v2149_v22 = vpop.f32.mrb[7].mxu1  ;;  %v659_v24 = vrot.slane %v654_v16, 2 }
 0xa75   :  { %v670_v23 = vrot.slane %v668_v17, 2  ;;  %v661_v25 = vadd.f32 %v659_v24, %v2554_v43 }
 0xa77   :  { %671 = vrot.lane.b32.xlu1 %v670_v23, %s2458_s7  ;;  %v1980_v26 = vmul.f32 -1.442695, %v661_v25 }
 0xa79   :  { %2385 = vpow2.f32 %v1980_v26 }
 0xa83   :  { %v2386_v29 = vpop.eup %2385 }
 0xa84   :  { %v665_v32 = vadd.f32 1.0, %v2386_v29 }
 0xa86   :  { %2387 = vrcp.f32 %v665_v32 }
 0xa90   :  { %v2388_v18 = vpop.eup %2387 }
 0xa91   :  { %v681_v40 = vsub.f32 1.0, %v2388_v18  ;;  %v689_v44 = vmul.f32 %v2388_v18, %v687_v41 }
 0xae9   :  { %v672_v33 = vpop.permute.xlu1 %671 }
 0xaea   :  { %v674_v34 = vmul.f32 %v2388_v18, %v672_v33 }
 0xaec   :  { %676 = vrot.lane.b32.xlu0 %v674_v34, %s2458_s7 }
 0xb5e   :  { %v677_v35 = vpop.permute.xlu0 %676 }
 0xb5f   :  { %v679_v36 = vadd.f32 %v677_v35, %v2554_v43 }
 0xb61   :  { %2389 = vtanh.f32 %v679_v36 }
 0xb6b   :  { %v2390_v38 = vpop.eup %2389 }
 0xb6c   :  { %683 = vrot.lane.b32.xlu1 %v2390_v38, %s2459_s10 }
 0xbde   :  { %v684_v42 = vpop.permute.xlu1 %683 }
 0xbdf   :  { %v686_v45 = vmul.f32 %v684_v42, %v681_v40 }
 0xbe1   :  { %v690_v46 = vadd.f32 %v689_v44, %v686_v45 }
 0xbe3   :  { %v1192_v47 = vcombine.high %v690_v46, %v690_v46  ;;  %v692_v48 = vrot.slane %v690_v46, 6 }
 0xbe5   :  { %v1199_v49 = vrot.slane %v1192_v47, %v2578_v20  ;;  %693 = vrot.lane.b32.xlu0 %v692_v48, %s2459_s10 }
 0xbe7   :  { %v1200_v50 = vcombine.high %v1199_v49, %v1199_v49  ;;  %v1207_v51 = vrot.slane %v1199_v49, %v2578_v20 }
 0xbe9   :  { %v1214_v43 = vrot.slane %v1200_v50, %v2578_v20  ;;  %v1215_v52 = vcombine.high %v1207_v51, %v1207_v51 }
 0xbeb   :  { %v1216_v53 = vcombine.high %v1214_v43, %v1214_v43  ;;  %v1335_v54 = vrot.slane %v1215_v52, %v2583_v30 }
 0xbed   :  { %v1339_v55 = vrot.slane %v1216_v53, %v2583_v30  ;;  %v1389_v56 = vsel %vm1388_vm8, %v1386_v12, %v1335_v54 }
 0xbef   :  { %v1390_v57 = vsel %vm1388_vm8, %v1387_v13, %v1339_v55 }
 0xc57   :  { %v694_v58 = vpop.permute.xlu0 %693 }
 0xc58   :  { %2159 = vmatmul.mubr.msk.f32.vlgmr.msra.gmra.mrb[4].mxu0 %vm256_vm5, %v694_v58 }
 0xc59   :  { %2311 = vmatpush3.bf16.msra.mxu0 %v2514_v27  ;;  %2180 = vmatprep.mubr.msk.f32.mxu0 %vm2457_vm3, %v2455_v21 }
 0xc5a   :  { %2312 = vmatprep.subr.bf16.mxu0 %v2456_v28 }
 0xc5d   :  { %2314 = vmatpush3.bf16.msra.mxu0 %v2520_v31 }
 0xc5e   :  { %2321 = vmatprep.subr.bf16.mxu0 %v2456_v28 }
 0xd2b   :  { %v763_v59 = vpop.f32.mrb[4].mxu0 }
 0xd2c   :  { %v774_v60 = vadd.f32 %v763_v59, %v2550_v39  ;;  %v2160_v61 = vpop.f32.mrb[5].mxu0  ;;  %v767_v62 = vadd.f32 %v763_v59, %v2548_v37 }
 0xd2e   :  { %776 = vrot.lane.b32.xlu1 %v774_v60, %s2458_s7  ;;  %v1982_v63 = vmul.f32 -1.442695, %v767_v62 }
 0xd30   :  { %2391 = vpow2.f32 %v1982_v63 }
 0xd3a   :  { %v2392_v0 = vpop.eup %2391 }
 0xd3b   :  { %v771_v1 = vadd.f32 1.0, %v2392_v0 }
 0xd3d   :  { %2393 = vrcp.f32 %v771_v1 }
 0xd47   :  { %v2394_v2 = vpop.eup %2393 }
 0xd48   :  { %v786_v8 = vsub.f32 1.0, %v2394_v2  ;;  %v793_v10 = vmul.f32 %v2394_v2, %v692_v48 }
 0xda0   :  { %v777_v3 = vpop.permute.xlu1 %776 }
 0xda1   :  { %v779_v4 = vmul.f32 %v2394_v2, %v777_v3 }
 0xda3   :  { %781 = vrot.lane.b32.xlu0 %v779_v4, %s2458_s7 }
 0xe15   :  { %v782_v5 = vpop.permute.xlu0 %781 }
 0xe16   :  { %v784_v6 = vadd.f32 %v782_v5, %v2548_v37 }
 0xe18   :  { %2395 = vtanh.f32 %v784_v6 }
 0xe22   :  { %v2396_v7 = vpop.eup %2395 }
 0xe23   :  { %788 = vrot.lane.b32.xlu1 %v2396_v7, %s2459_s10 }
 0xe95   :  { %v789_v9 = vpop.permute.xlu1 %788 }
 0xe96   :  { %v791_v11 = vmul.f32 %v789_v9, %v786_v8 }
 0xe98   :  { %v794_v12 = vadd.f32 %v793_v10, %v791_v11 }
 0xe9a   :  { %v1223_v13 = vrot.slane %v794_v12, %v2578_v20  ;;  %796 = vrot.lane.b32.xlu0 %v794_v12, %s2459_s10  ;;  %v899_v47 = vrot.slane %v794_v12, 6 }
 0xe9c   :  { %v1224_v15 = vcombine.high %v1223_v13, %v1223_v13  ;;  %v1231_v16 = vrot.slane %v1223_v13, %v2578_v20 }
 0xe9e   :  { %v1238_v17 = vrot.slane %v1224_v15, %v2578_v20  ;;  %v1345_v22 = vrot.slane %v1231_v16, %v2583_v30 }
 0xea0   :  { %v1349_v23 = vrot.slane %v1238_v17, %v2583_v30  ;;  %v1392_v24 = vsel %vm1391_vm9, %v1389_v56, %v1345_v22 }
 0xea2   :  { %v1393_v25 = vsel %vm1391_vm9, %v1390_v57, %v1349_v23 }
 0xf0c   :  { %v797_v26 = vpop.permute.xlu0 %796 }
 0xf0d   :  { %2170 = vmatmul.mubr.msk.f32.vlgmr.msra.gmra.mrb[8].mxu1 %vm256_vm5, %v797_v26 }
 0xf0e   :  { %2317 = vmatpush3.bf16.msra.mxu1 %v2514_v27  ;;  %2191 = vmatprep.mubr.msk.f32.mxu1 %vm2457_vm3, %v2455_v21 }
 0xf0f   :  { %2318 = vmatprep.subr.bf16.mxu1 %v2456_v28 }
 0xf12   :  { %2320 = vmatpush3.bf16.msra.mxu1 %v2520_v31 }
 0xf13   :  { %2333 = vmatprep.subr.bf16.mxu1 %v2456_v28 }
 0xfe0   :  { %v866_v29 = vpop.f32.mrb[8].mxu1 }
 0xfe1   :  { %v880_v32 = vadd.f32 %v866_v29, %v2550_v39  ;;  %v2171_v18 = vpop.f32.mrb[9].mxu1  ;;  %v871_v34 = vrot.slane %v866_v29, 6 }
 0xfe3   :  { %v882_v33 = vrot.slane %v880_v32, 6  ;;  %v873_v35 = vadd.f32 %v871_v34, %v2548_v37 }
 0xfe5   :  { %883 = vrot.lane.b32.xlu1 %v882_v33, %s2458_s7  ;;  %v1984_v27 = vmul.f32 -1.442695, %v873_v35 }
 0xfe7   :  { %2397 = vpow2.f32 %v1984_v27 }
 0xff1   :  { %v2398_v36 = vpop.eup %2397 }
 0xff2   :  { %v877_v38 = vadd.f32 1.0, %v2398_v36 }
 0xff4   :  { %2399 = vrcp.f32 %v877_v38 }
 0xffe   :  { %v2400_v40 = vpop.eup %2399 }
 0xfff   :  { %v893_v46 = vsub.f32 1.0, %v2400_v40  ;;  %v901_v50 = vmul.f32 %v2400_v40, %v899_v47 }
0x1057   :  { %v884_v41 = vpop.permute.xlu1 %883 }
0x1058   :  { %v886_v31 = vmul.f32 %v2400_v40, %v884_v41 }
0x105a   :  { %888 = vrot.lane.b32.xlu0 %v886_v31, %s2458_s7 }
0x10cc   :  { %v889_v42 = vpop.permute.xlu0 %888 }
0x10cd   :  { %v891_v44 = vadd.f32 %v889_v42, %v2548_v37 }
0x10cf   :  { %2401 = vtanh.f32 %v891_v44 }
0x10d9   :  { %v2402_v45 = vpop.eup %2401 }
0x10da   :  { %895 = vrot.lane.b32.xlu1 %v2402_v45, %s2459_s10 }
0x114c   :  { %v896_v48 = vpop.permute.xlu1 %895 }
0x114d   :  { %v898_v49 = vmul.f32 %v896_v48, %v893_v46 }
0x114f   :  { %v902_v51 = vadd.f32 %v901_v50, %v898_v49 }
0x1151   :  { %v1245_v43 = vrot.slane %v902_v51, %v2578_v20  ;;  %v904_v52 = vrot.slane %v902_v51, 2  ;;  %v1008_v16 = vrot.slane %v902_v51, 6 }
0x1153   :  { %v1246_v53 = vcombine.high %v1245_v43, %v1245_v43  ;;  %v1253_v54 = vrot.slane %v1245_v43, %v2578_v20  ;;  %905 = vrot.lane.b32.xlu0 %v904_v52, %s2459_s10 }
0x1155   :  { %v1260_v55 = vrot.slane %v1246_v53, %v2578_v20  ;;  %v1261_v56 = vcombine.high %v1253_v54, %v1253_v54 }
0x1157   :  { %v1262_v57 = vcombine.high %v1260_v55, %v1260_v55  ;;  %v1355_v58 = vrot.slane %v1261_v56, %v2583_v30 }
0x1159   :  { %v1359_v59 = vrot.slane %v1262_v57, %v2583_v30  ;;  %v1395_v60 = vsel %vm1394_vm10, %v1392_v24, %v1355_v58 }
0x115b   :  { %v1396_v61 = vsel %vm1394_vm10, %v1393_v25, %v1359_v59 }
0x11c5   :  { %v906_v62 = vpop.permute.xlu0 %905 }
0x11c6   :  { %2181 = vmatmul.mubr.msk.f32.vlgmr.msra.gmra.mrb[6].mxu0 %vm256_vm5, %v906_v62 }
0x11c7   :  { %2210 = vmatprep.mubr.msk.f32.mxu0 %vm2457_vm3, %v2455_v21 }
0x1299   :  { %v975_v63 = vpop.f32.mrb[6].mxu0 }
0x129a   :  { %v989_v0 = vadd.f32 %v975_v63, %v2550_v39  ;;  %v2182_v1 = vpop.f32.mrb[7].mxu0  ;;  %v980_v3 = vrot.slane %v975_v63, 4 }
0x129c   :  { %v991_v2 = vrot.slane %v989_v0, 4  ;;  %v982_v4 = vadd.f32 %v980_v3, %v2548_v37 }
0x129e   :  { %992 = vrot.lane.b32.xlu1 %v991_v2, %s2458_s7  ;;  %v1986_v5 = vmul.f32 -1.442695, %v982_v4 }
0x12a0   :  { %2403 = vpow2.f32 %v1986_v5 }
0x12aa   :  { %v2404_v6 = vpop.eup %2403 }
0x12ab   :  { %v986_v7 = vadd.f32 1.0, %v2404_v6 }
0x12ad   :  { %2405 = vrcp.f32 %v986_v7 }
0x12b7   :  { %v2406_v8 = vpop.eup %2405 }
0x12b8   :  { %v1002_v15 = vsub.f32 1.0, %v2406_v8  ;;  %v1010_v22 = vmul.f32 %v2406_v8, %v1008_v16 }
0x1310   :  { %v993_v9 = vpop.permute.xlu1 %992 }
0x1311   :  { %v995_v10 = vmul.f32 %v2406_v8, %v993_v9 }
0x1313   :  { %997 = vrot.lane.b32.xlu0 %v995_v10, %s2458_s7  ;;  %v1503_v10 = vsub.s32 %v2506_v19, %v2575_v14 }
0x1385   :  { %v998_v11 = vpop.permute.xlu0 %997 }
0x1386   :  { %v1000_v12 = vadd.f32 %v998_v11, %v2548_v37 }
0x1388   :  { %2407 = vtanh.f32 %v1000_v12 }
0x1392   :  { %v2408_v13 = vpop.eup %2407 }
0x1393   :  { %1004 = vrot.lane.b32.xlu1 %v2408_v13, %s2459_s10 }
0x1405   :  { %v1005_v17 = vpop.permute.xlu1 %1004 }
0x1406   :  { %v1007_v23 = vmul.f32 %v1005_v17, %v1002_v15 }
0x1408   :  { %v1011_v24 = vadd.f32 %v1010_v22, %v1007_v23  ;;  %v55_v22 = vld [vmem:[#allocation2 + $0xc0] sm:$0xff]  ;;  %v56_v23 = vld [vmem:[#allocation2 + $0xc8] sm:$0xff] }
0x140a   :  { %v1263_v25 = vcombine.high %v1011_v24, %v1011_v24  ;;  %v1013_v26 = vrot.slane %v1011_v24, 4  ;;  %v1117_v54 = vrot.slane %v1011_v24, 6  ;;  %v57_v24 = vld [vmem:[#allocation2 + $0xd0] sm:$0xff] }
0x140c   :  { %v1270_v29 = vrot.slane %v1263_v25, %v2578_v20  ;;  %1014 = vrot.lane.b32.xlu0 %v1013_v26, %s2459_s10  ;;  %v2322_v25 = vpack.c.bf16 %v56_v23, %v55_v22  ;;  %v58_v26 = vld [vmem:[#allocation2 + $0xd8] sm:$0xff] }
0x140e   :  { %v1271_v32 = vcombine.high %v1270_v29, %v1270_v29  ;;  %v1278_v18 = vrot.slane %v1270_v29, %v2578_v20  ;;  %2323 = vmatpush3.bf16.msra.mxu0 %v2322_v25  ;;  %v2325_v29 = vpack.c.bf16 %v58_v26, %v57_v24 }
0x140f   :  { %2324 = vmatprep.subr.bf16.mxu0 %v2456_v28 }
0x1410   :  { %v1285_v33 = vrot.slane %v1271_v32, %v2578_v20  ;;  %v1365_v34 = vrot.slane %v1278_v18, %v2583_v30  ;;  %v59_v32 = vld [vmem:[#allocation2 + $0xe0] sm:$0xff]  ;;  %v60_v18 = vld [vmem:[#allocation2 + $0xe8] sm:$0xff] }
0x1412   :  { %v1398_v35 = vsel %vm1397_vm11, %v1395_v60, %v1365_v34  ;;  %v1369_v27 = vrot.slane %v1285_v33, %v2583_v30  ;;  %2326 = vmatpush3.bf16.msra.mxu0 %v2325_v29  ;;  %v2328_v33 = vpack.c.bf16 %v60_v18, %v59_v32  ;;  %v1523_v34 = vsub.s32 1, %v2575_v14 }
0x1413   :  { %2327 = vmatprep.subr.bf16.mxu0 %v2456_v28 }
0x1414   :  { %v1399_v36 = vsel %vm1397_vm11, %v1396_v61, %v1369_v27 }
0x1416   :  { %2329 = vmatpush3.bf16.msra.mxu0 %v2328_v33 }
0x1417   :  { %2330 = vmatprep.subr.bf16.mxu0 %v2456_v28 }
0x147e   :  { %v1015_v38 = vpop.permute.xlu0 %1014 }
0x147f   :  { %2192 = vmatmul.mubr.msk.f32.vlgmr.msra.gmra.mrb[10].mxu1 %vm256_vm5, %v1015_v38 }
0x1480   :  { %2221 = vmatprep.mubr.msk.f32.mxu1 %vm2457_vm3, %v2455_v21 }
0x1552   :  { %v1084_v40 = vpop.f32.mrb[10].mxu1 }
0x1553   :  { %v1098_v41 = vadd.f32 %v1084_v40, %v2550_v39  ;;  %v2193_v31 = vpop.f32.mrb[11].mxu1  ;;  %v1089_v44 = vrot.slane %v1084_v40, 2 }
0x1555   :  { %v1100_v42 = vrot.slane %v1098_v41, 2  ;;  %v1091_v45 = vadd.f32 %v1089_v44, %v2548_v37 }
0x1557   :  { %1101 = vrot.lane.b32.xlu1 %v1100_v42, %s2458_s7  ;;  %v1988_v46 = vmul.f32 -1.442695, %v1091_v45  ;;  %v61_v45 = vld [vmem:[#allocation2 + $0xf0] sm:$0xff] }
0x1559   :  { %2409 = vpow2.f32 %v1988_v46  ;;  %v62_v46 = vld [vmem:[#allocation2 + $0xf8] sm:$0xff] }
0x1563   :  { %v2410_v47 = vpop.eup %2409 }
0x1564   :  { %v1095_v48 = vadd.f32 1.0, %v2410_v47  ;;  %v1403_v47 = vld [vmem:[%s2783_s1] sm:$0x3] }
0x1566   :  { %2411 = vrcp.f32 %v1095_v48  ;;  %v2331_v48 = vpack.c.bf16 %v62_v46, %v61_v45 }
0x1568   :  { %2332 = vmatpush3.bf16.msra.mxu0 %v2331_v48 }
0x1569   :  { %2342 = vmatprep.subr.bf16.mxu0 %v2456_v28 }
0x1570   :  { %v2412_v49 = vpop.eup %2411 }
0x1571   :  { %v1111_v53 = vsub.f32 1.0, %v2412_v49  ;;  %v1119_v56 = vmul.f32 %v2412_v49, %v1117_v54 }
0x15c9   :  { %v1102_v50 = vpop.permute.xlu1 %1101 }
0x15ca   :  { %v1104_v51 = vmul.f32 %v2412_v49, %v1102_v50 }
0x15cc   :  { %1106 = vrot.lane.b32.xlu0 %v1104_v51, %s2458_s7 }
0x163e   :  { %v1107_v43 = vpop.permute.xlu0 %1106 }
0x163f   :  { %v1109_v39 = vadd.f32 %v1107_v43, %v2548_v37 }
0x1641   :  { %2413 = vtanh.f32 %v1109_v39 }
0x164b   :  { %v2414_v52 = vpop.eup %2413 }
0x164c   :  { %1113 = vrot.lane.b32.xlu1 %v2414_v52, %s2459_s10 }
0x16be   :  { %v1114_v55 = vpop.permute.xlu1 %1113 }
0x16bf   :  { %v1116_v57 = vmul.f32 %v1114_v55, %v1111_v53 }
0x16c1   :  { %v2694_v58 = vadd.f32 %v1119_v56, %v1116_v57 }
0x16c3   :  { %v1287_v59 = vcombine.high %v2694_v58, %v2694_v58 }
0x16c5   :  { %v1294_v60 = vrot.slane %v1287_v59, %v2578_v20 }
0x16c7   :  { %v1295_v61 = vcombine.high %v1294_v60, %v1294_v60  ;;  %v1302_v62 = vrot.slane %v1294_v60, %v2578_v20 }
0x16c9   :  { %v1310_v37 = vcombine.high %v1302_v62, %v1302_v62  ;;  %v1309_v63 = vrot.slane %v1295_v61, %v2578_v20  ;;  %v43_v61 = vld [vmem:[#allocation2 + $0x60] sm:$0xff]  ;;  %v44_v62 = vld [vmem:[#allocation2 + $0x68] sm:$0xff] }
0x16cb   :  { %v1375_v0 = vrot.slane %v1310_v37, %v2583_v30  ;;  %v1311_v1 = vcombine.high %v1309_v63, %v1309_v63  ;;  %v2343_v37 = vpack.c.bf16 %v44_v62, %v43_v61 }
0x16cd   :  { %v2702_v2 = vsel %vm1400_vm12, %v1398_v35, %v1375_v0  ;;  %v1379_v3 = vrot.slane %v1311_v1, %v2583_v30  ;;  %v46_v1 = vld [vmem:[#allocation2 + $0x78] sm:$0xff] }
0x16ce   :  { %v1483_v4 = vmul.f32 %v2702_v2, %v1375_v0  ;;  %v45_v0 = vld [vmem:[#allocation2 + $0x70] sm:$0xff] }
0x16cf   :  { %v2706_v5 = vsel %vm1400_vm12, %v1399_v36, %v1379_v3 }
0x16d0   :  { %1487 = vrot.lane.b32.xlu0 %v1483_v4, %s2459_s10  ;;  %v1484_v6 = vmul.f32 %v2706_v5, %v1379_v3  ;;  %v2346_v3 = vpack.c.bf16 %v46_v1, %v45_v0  ;;  %v1750_v4 = vrot.slane %v2694_v58, 6  ;;  %v63_v0 = vld [vmem:[#allocation2 + $0x100] sm:$0xff]  ;;  %v64_v1 = vld [vmem:[#allocation2 + $0x108] sm:$0xff] }
0x16d2   :  { %1489 = vrot.lane.b32.xlu1 %v1484_v6, %s2459_s10  ;;  %v40_v6 = vld [vmem:[#allocation2 + $0x48] sm:$0xff] }
0x1742   :  { %v1488_v7 = vpop.permute.xlu0 %1487 }
0x1743   :  { %v1493_v20 = vsel %vm256_vm5, %v1488_v7, 0.0  ;;  %v41_v7 = vld [vmem:[#allocation2 + $0x50] sm:$0xff] }
0x1744   :  { %1494 = vadd.xlane.f32.xlu0 %v1493_v20  ;;  %v1490_v8 = vpop.permute.xlu1 %1489 }
0x1745   :  { %v1496_v9 = vsel %vm256_vm5, %v1490_v8, 0.0  ;;  %v42_v8 = vld [vmem:[#allocation2 + $0x58] sm:$0xff] }
0x1746   :  { %1497 = vadd.xlane.f32.xlu1 %v1496_v9  ;;  %v2337_v9 = vpack.c.bf16 %v42_v8, %v41_v7 }
0x17d1   :  { %v1495_v11 = vpop.xlane.xlu0 %1494 }
0x17d2   :  { %v1504_v13 = vrot.slane %v1495_v11, %v1503_v10 }
0x17d3   :  { %v1498_v12 = vpop.xlane.xlu1 %1497 }
0x17d4   :  { %v1508_v15 = vrot.slane %v1498_v12, %v1503_v10 }
0x17d6   :  { %v1510_v16 = vsel %vm1509_vm13, %v1508_v15, %v1504_v13 }
0x17d7   :  { %v1513_v17 = vsel %vm1512_vm14, %v1510_v16, -inf }
0x17d8   :  { %1514 = vmax.xlane.f32.xlu0 %v1513_v17 }
0x1865   :  { %v1515_v35 = vpop.xlane.xlu0 %1514 }
0x1866   :  { %v1520_v27 = vrot.slane %v1515_v35, %v2583_v30  ;;  %v1524_v36 = vrot.slane %v1515_v35, %v1523_v34 }
0x1868   :  { %v1527_v38 = vsub.f32 %v1495_v11, %v1520_v27  ;;  %v1528_v40 = vsub.f32 %v1498_v12, %v1524_v36  ;;  %v1943_v12 = vadd.s32 4294967200, %v2506_v19 }
0x186a   :  { %v1529_v41 = vmul.f32 1.442695, %v1527_v38  ;;  %v1531_v31 = vmul.f32 1.442695, %v1528_v40  ;;  %v1946_v15 = vsub.s32 %v1943_v12, %v2575_v14 }
0x186c   :  { %2415 = vpow2.f32 %v1529_v41 }
0x186d   :  { %2417 = vpow2.f32 %v1531_v31  ;;  %v1996_v31 = vld [vmem:[%s2785_s3 + $0x3] ss:$0 sm:$0xff] }
0x1876   :  { %v2416_v42 = vpop.eup %2415 }
0x1877   :  { %v2418_v44 = vpop.eup %2417  ;;  %1536 = vperm.xlu0 %2365, %v2416_v42  }
0x1878   :  { %1539 = vperm.xlu1 %2366, %v2418_v44  }
0x187c   :  { %1405 = vperm.xlu1 %2366, %v1403_v47  }
0x18f6   :  { %v1537_v49 = vpop.permute.xlu0 %1536 }
0x18f7   :  { %v1540_v50 = vpop.permute.xlu1 %1539  ;;  %v1544_v51 = vrot.slane %v1537_v49, %v1503_v10 }
0x18f8   :  { %v1548_v43 = vrot.slane %v1540_v50, %v1503_v10 }
0x18fa   :  { %v1549_v39 = vsel %vm1509_vm13, %v1548_v43, %v1544_v51 }
0x18fb   :  { %v1406_v52 = vpop.permute.xlu1 %1405  ;;  %v1551_v53 = vsel %vm1512_vm14, %v1549_v39, 0.0  ;;  %v1993_v39 = vld [vmem:[%s2785_s3 + $0x2] ss:$0 sm:$0xff] }
0x18fc   :  { %vm1407_vm15 = vcmp.eq.s32.totalorder %v1406_v52, %v2506_v19  ;;  %1552 = vadd.xlane.f32.xlu0 %v1551_v53 }
0x18fd   :  { %v1989_v54 = vsel %vm1407_vm15, 1.0, %v2455_v21 }
0x18fe   :  { %2211 = vmatmul.mubr.msk.f32.vlgmr.msra.gmra.mrb[8].mxu0 %vm88_vm0, %v1989_v54 }
0x18ff   :  { %2239 = vmatprep.mubr.msk.f32.mxu0 %vm2457_vm3, %v2455_v21  ;;  %2344 = vmatpush3.bf16.msra.mxu0 %v2343_v37 }
0x1900   :  { %2345 = vmatprep.subr.bf16.mxu0 %v2456_v28 }
0x1903   :  { %2347 = vmatpush3.bf16.msra.mxu0 %v2346_v3  ;;  %v65_v3 = vld [vmem:[#allocation2 + $0x110] sm:$0xff] }
0x1989   :  { %v1553_v55 = vpop.xlane.xlu0 %1552 }
0x198a   :  { %2419 = vrcp.f32 %v1553_v55 }
0x1994   :  { %v2420_v56 = vpop.eup %2419 }
0x1995   :  { %v1559_v57 = vrot.slane %v2420_v56, %v2583_v30  ;;  %v1563_v60 = vrot.slane %v2420_v56, %v1523_v34  ;;  %v39_v30 = vld [vmem:[#allocation2 + $0x40] sm:$0xff] }
0x1996   :  { %v2334_v20 = vpack.c.bf16 %v40_v6, %v39_v30  ;;  %v2349_v30 = vpack.c.bf16 %v64_v1, %v63_v0  ;;  %v66_v6 = vld [vmem:[#allocation2 + $0x118] sm:$0xff] }
0x1997   :  { %v1566_v59 = vmul.f32 %v2416_v42, %v1559_v57  ;;  %v1567_v63 = vmul.f32 %v2418_v44, %v1563_v60  ;;  %v37_v42 = vld [vmem:[#allocation2 + $0x30] sm:$0xff]  ;;  %v38_v44 = vld [vmem:[#allocation2 + $0x38] sm:$0xff]  ;;  %v2352_v7 = vpack.c.bf16 %v66_v6, %v65_v3 }
0x1998   :  { %2335 = vmatpush3.bf16.msra.mxu1 %v2334_v20  ;;  %v2340_v45 = vpack.c.bf16 %v38_v44, %v37_v42 }
0x1999   :  { %1570 = vperm.xlu1 %2366, %v1566_v59   ;;  %2336 = vmatprep.subr.bf16.mxu1 %v2456_v28 }
0x199c   :  { %2338 = vmatpush3.bf16.msra.mxu1 %v2337_v9 }
0x199d   :  { %1575 = vperm.xlu1 %2366, %v1567_v63   ;;  %2339 = vmatprep.subr.bf16.mxu1 %v2456_v28 }
0x19a1   :  { %1751 = vrot.lane.b32.xlu1 %v1750_v4, %s2459_s10 }
0x19d1   :  { %v1479_v10 = vpop.f32.mrb[8].mxu0 }
0x19d2   :  { %v2212_v11 = vpop.f32.mrb[9].mxu0 }
0x1a18   :  { %v1571_v13 = vpop.permute.xlu1 %1570 }
0x1a19   :  { %v1578_v16 = vmul.f32 %v1571_v13, %v2702_v2  ;;  %v1947_v24 = vrot.slane %v1571_v13, %v1946_v15 }
0x1a1b   :  { %v1581_v17 = vsel %vm1580_vm1, %v1578_v16, 0.0 }
0x1a1c   :  { %v1582_v22 = vrot.slane %v1581_v17, 4  ;;  %v1576_v23 = vpop.permute.xlu1 %1575 }
0x1a1d   :  { %v1579_v25 = vmul.f32 %v1576_v23, %v2706_v5  ;;  %v1951_v26 = vrot.slane %v1576_v23, %v1946_v15 }
0x1a1e   :  { %v1583_v29 = vadd.f32 %v1582_v22, %v1581_v17 }
0x1a1f   :  { %v1588_v32 = vsel %vm1580_vm1, %v1579_v25, 0.0  ;;  %v2746_v18 = vsel %vm1509_vm13, %v1951_v26, %v1947_v24 }
0x1a20   :  { %v1584_v33 = vrot.slane %v1583_v29, 2  ;;  %v1589_v19 = vrot.slane %v1588_v32, 4  ;;  %v1752_v34 = vpop.permute.xlu1 %1751 }
0x1a21   :  { %2240 = vmatmul.mubr.msk.f32.vlgmr.msra.gmra.mrb[10].mxu0 %vm256_vm5, %v1752_v34 }
0x1a22   :  { %v1585_v14 = vadd.f32 %v1584_v33, %v1583_v29  ;;  %v1590_v35 = vadd.f32 %v1589_v19, %v1588_v32 }
0x1a24   :  { %v1591_v2 = vrot.slane %v1590_v35, 2  ;;  %v1586_v36 = vrot.slane %v1585_v14, 1 }
0x1a26   :  { %v1592_v27 = vadd.f32 %v1591_v2, %v1590_v35  ;;  %v1587_v40 = vadd.f32 %v1586_v36, %v1585_v14 }
0x1a28   :  { %v1593_v38 = vrot.slane %v1592_v27, 1 }
0x1a2a   :  { %v1594_v41 = vadd.f32 %v1593_v38, %v1592_v27 }
0x1a2c   :  { %v1597_v5 = vsel %vm1509_vm13, %v1594_v41, %v1587_v40 }
0x1a2d   :  { %1598 = vrot.lane.b32.xlu1 %v1597_v5, %s2459_s10 }
0x1a31   :  { %1837 = vrot.lane.b32.xlu1 %v1996_v31, %s2458_s7 }
0x1a9f   :  { %v1599_v46 = vpop.permute.xlu1 %1598 }
0x1aa0   :  { %2222 = vmatmul.mubr.msk.f32.vlgmr.msra.gmra.mrb[12].mxu1 %vm256_vm5, %v1599_v46 }
0x1aa1   :  { %2341 = vmatpush3.bf16.msra.mxu1 %v2340_v45  ;;  %2228 = vmatprep.mubr.msk.f32.mxu1 %vm2457_vm3, %v2455_v21 }
0x1aa2   :  { %2348 = vmatprep.subr.bf16.mxu1 %v2456_v28 }
0x1aa3   :  { %v1838_v47 = vpop.permute.xlu1 %1837 }
0x1aa4   :  { %2229 = vmatmul.mubr.msk.f32.vlgmr.msra.gmra.mrb[14].mxu1 %vm174_vm4, %v1479_v10 }
0x1aa5   :  { %2250 = vmatprep.mubr.msk.f32.mxu1 %vm2457_vm3, %v2455_v21  ;;  %2350 = vmatpush3.bf16.msra.mxu1 %v2349_v30  ;;  %vm1957_vm3 = vcmask 850944  }
0x1aa6   :  { %2351 = vmatprep.subr.bf16.mxu1 %v2456_v28  ;;  %v1997_v28 = vld [vmem:[%s2785_s3 + $0x4] ss:$0 sm:$0xff] }
0x1aa9   :  { %2353 = vmatpush3.bf16.msra.mxu1 %v2352_v7 }
0x1af4   :  { %v1821_v48 = vpop.f32.mrb[10].mxu0 }
0x1af5   :  { %v1840_v49 = vadd.f32 %v1838_v47, %v1821_v48  ;;  %v2241_v50 = vpop.f32.mrb[11].mxu0 }
0x1af7   :  { %1842 = vrot.lane.b32.xlu1 %v1840_v49, %s2458_s7 }
0x1b69   :  { %v1843_v61 = vpop.permute.xlu1 %1842 }
0x1b73   :  { %v1668_v51 = vpop.f32.mrb[12].mxu1 }
0x1b74   :  { %v2223_v43 = vpop.f32.mrb[13].mxu1 }
0x1b77   :  { %v1741_v52 = vpop.f32.mrb[14].mxu1 }
0x1b78   :  { %v1742_v53 = vadd.f32 %v1741_v52, %v1668_v51  ;;  %v2230_v54 = vpop.f32.mrb[15].mxu1 }
0x1b7a   :  { %v1749_v55 = vadd.f32 %v1993_v39, %v1742_v53 }
0x1b7c   :  { %v1825_v56 = vadd.f32 %v1821_v48, %v1749_v55 }
0x1b7e   :  { %v1995_v57 = vmul.f32 -1.442695, %v1825_v56 }
0x1b80   :  { %2421 = vpow2.f32 %v1995_v57 }
0x1b8a   :  { %v2422_v21 = vpop.eup %2421 }
0x1b8b   :  { %v1829_v59 = vadd.f32 1.0, %v2422_v21 }
0x1b8d   :  { %2423 = vrcp.f32 %v1829_v59 }
0x1b97   :  { %v2424_v60 = vpop.eup %2423 }
0x1b98   :  { %v1845_v62 = vmul.f32 %v2424_v60, %v1843_v61  ;;  %v1852_v8 = vsub.f32 1.0, %v2424_v60  ;;  %v1859_v10 = vmul.f32 %v2424_v60, %v1750_v4 }
0x1b9a   :  { %1847 = vrot.lane.b32.xlu1 %v1845_v62, %s2458_s7 }
0x1c0c   :  { %v1848_v37 = vpop.permute.xlu1 %1847 }
0x1c0d   :  { %v1850_v63 = vadd.f32 %v1848_v37, %v1749_v55 }
0x1c0f   :  { %2425 = vtanh.f32 %v1850_v63 }
0x1c19   :  { %v2426_v20 = vpop.eup %2425 }
0x1c1a   :  { %1854 = vrot.lane.b32.xlu1 %v2426_v20, %s2459_s10 }
0x1c8c   :  { %v1855_v9 = vpop.permute.xlu1 %1854 }
0x1c8d   :  { %v1857_v11 = vmul.f32 %v1855_v9, %v1852_v8 }
0x1c8f   :  { %v1860_v12 = vadd.f32 %v1859_v10, %v1857_v11 }
0x1c91   :  { %1940 = vrot.lane.b32.xlu1 %v1860_v12, %s2461_s16  ;;  %1866 = vrot.lane.b32.xlu0 %v1860_v12, %s2459_s10 }
0x1d03   :  { %v1867_v13 = vpop.permute.xlu0 %1866  ;;  %v1941_v22 = vpop.permute.xlu1 %1940 }
0x1d04   :  { %2251 = vmatmul.mubr.msk.f32.vlgmr.msra.gmra.mrb[16].mxu1 %vm256_vm5, %v1867_v13 }
0x1dd7   :  { %v1936_v15 = vpop.f32.mrb[16].mxu1 }
0x1dd8   :  { %v1937_v16 = vadd.f32 %v1997_v28, %v1936_v15  ;;  %v2252_v17 = vpop.f32.mrb[17].mxu1 }
0x1dda   :  { %v1954_v58 = vsel %vm88_vm0, %v1937_v16, %v1941_v22 }
0x1ddb   :  { %v1956_v4 = vsel %vm1955_vm2, %v1954_v58, %v2746_v18 }
0x1ddc   :  { %v1958_v23 = vsel %vm1957_vm3, %v1956_v4, 0.0 }
0x1ddd   :  { %v1959_v24 = vsel %vm1385_vm7, %v1958_v23, 0.0 }
0x1dde   :  { %1960 = vst [vmem:[%s2786_s4] sm:$0xff] %v1959_v24 }
0x1ddf   :  { %1965 = vsyncpa [#allocation3], 1 }

</bundles_post_ra>
